<compile_context>
chip_gen: v6e
topology: v6e:2x2x1
jax: 0.10.0
libtpu: 0.0.40
codegen_flags: <defaults>
</compile_context>

<pallas_src>
import functools
import math

import jax
import jax.numpy as jnp
from jax import lax
from jax.experimental import pallas as pl
from jax.experimental.pallas import tpu as pltpu


def make_pe(C, H, W):
    """2D sinusoidal positional encoding, identical to PositionalEncoding2D."""
    d_h = C // 2
    d_w = C - d_h
    div_h = jnp.exp(jnp.arange(0, d_h, 2, dtype=jnp.float32) * -(math.log(10000.0) / d_h))
    div_w = jnp.exp(jnp.arange(0, d_w, 2, dtype=jnp.float32) * -(math.log(10000.0) / d_w))
    pos_h = jnp.arange(H, dtype=jnp.float32)[:, None]
    pos_w = jnp.arange(W, dtype=jnp.float32)[:, None]
    pe_h = jnp.zeros((d_h, H, W), jnp.float32)
    pe_h = pe_h.at[0:d_h:2].set(jnp.sin(pos_h * div_h).T[:, :, None])
    pe_h = pe_h.at[1:d_h:2].set(jnp.cos(pos_h * div_h).T[:, :, None])
    pe_w = jnp.zeros((d_w, H, W), jnp.float32)
    pe_w = pe_w.at[0:d_w:2].set(jnp.sin(pos_w * div_w).T[:, None, :])
    pe_w = pe_w.at[1:d_w:2].set(jnp.cos(pos_w * div_w).T[:, None, :])
    return jnp.concatenate([pe_h, pe_w], axis=0)  # (C, H, W)


def _cross_attn_kernel(xq_ref, xkv_ref, pe_ref, hmask_ref,
                       wq_ref, bq_ref, wkv_ref, bkv_ref,
                       watt_ref, woq_ref, bout_ref,
                       out_ref, *, num_heads):
    S, C = pe_ref.shape
    nh = num_heads
    f32 = jnp.float32

    pe = pe_ref[...]
    xq = xq_ref[0] + pe          # (S, C) pos-encoded query tokens (compute dtype)
    xkv = xkv_ref[0] + pe        # (S, C) pos-encoded key/value tokens
    cdt = xq.dtype

    # Folded projections; weights are pre-transposed to (in, out) in the wrapper so
    # the MXU sees a lane-dense N dim and no in-kernel transpose is needed.
    # The 1/sqrt(head_dim) scale is already folded into wq/bq.
    q2 = (jnp.dot(xq, wq_ref[...], preferred_element_type=f32)
          + bq_ref[...].astype(f32)).astype(cdt)                    # (S, C)
    kv2 = (jnp.dot(xkv, wkv_ref[...], preferred_element_type=f32)
           + bkv_ref[...].astype(f32)).astype(cdt)                  # (S, 2C)
    k2 = kv2[:, :C]
    v2 = kv2[:, C:]

    # Block-diagonal Q (heads stacked along the sublane axis) via the grid-invariant
    # (nh, C) head mask: q_bd[h*S + i, c] = q2[i, c] if channel c belongs to head h.
    hmask = hmask_ref[...]                                           # (nh, C)
    q_bd = (q2[None, :, :] * hmask[:, None, :]).reshape(nh * S, C)   # (nh*S, C)

    # scores[h*S + i, j] = q_h[i] . k_h[j]  -- ONE matmul for all heads (A @ B^T).
    scores = lax.dot_general(q_bd, k2, (((1,), (1,)), ((), ())),
                             preferred_element_type=f32)             # (nh*S, S), f32

    # Batched softmax over all heads (f32 statistics).
    m = jnp.max(scores, axis=-1, keepdims=True)
    p = jnp.exp(scores - m)
    l = jnp.sum(p, axis=-1, keepdims=True)
    pnorm = p * pl.reciprocal(l, approx=True)                        # (nh*S, S)

    # AdaptiveAvgPool token mean folded THROUGH the PV matmul:
    #   mean_i pnorm_h[i,:] @ v_h == (1/S) * (sum_i pnorm_h[i,:]) @ v_h
    a = jnp.sum(pnorm.reshape(nh, S, S), axis=1)                     # (nh, S)
    m_h = jnp.dot(a, v2.astype(f32), preferred_element_type=f32)     # (nh, C)
    inv_s = 1.0 / S
    # Pick each head's own channel block (concat-over-heads) during the reduction.
    att_mean = jnp.sum(m_h * hmask, axis=0, keepdims=True) * inv_s   # (1, C), f32
    xq_mean = jnp.sum(xq.astype(f32), axis=0, keepdims=True) * inv_s  # (1, C), f32

    # fused = out_proj_att(MHA out_proj(attn)) + out_proj_q(pos-encoded feat_q)
    # with the MHA out_proj folded into out_proj_att and all biases pre-summed.
    out = (jnp.dot(att_mean, watt_ref[...], preferred_element_type=f32)
           + jnp.dot(xq_mean, woq_ref[...], preferred_element_type=f32)
           + bout_ref[...])
    # TODO(synk): O < 128 forces a masked store here; pad O to a lane-dense width if
    # the per-step output ever grows.
    out_ref[0] = out.astype(out_ref.dtype)


def cross_attention_images(feat_q, feat_kv, params, num_heads=8,
                           compute_dtype=jnp.float32):
    B, C, H, W = feat_q.shape
    assert C % 4 == 0, "PositionalEncoding2D requires C % 4 == 0"
    assert C % num_heads == 0, "MultiheadAttention requires C % num_heads == 0"
    S = H * W
    O = params["woq"].shape[0]
    hd = C // num_heads
    scale = 1.0 / math.sqrt(hd)

    pe = make_pe(C, H, W).reshape(C, S).T                      # (S, C)
    xq = feat_q.transpose(0, 2, 3, 1).reshape(B, S, C)         # NCHW -> (B, S, C)
    xkv = feat_kv.transpose(0, 2, 3, 1).reshape(B, S, C)

    win, b_in = params["win"], params["bin"]
    # Fold the 1x1-conv q/k/v projections into the MHA in_proj; fold the 1/sqrt(hd)
    # scale into Q.  Pre-transpose everything to (in, out) layout for the kernel.
    wq_t = ((win[:C] @ params["wqc"]) * scale).T                       # (C, C)
    bq = (params["bqc"] @ win[:C].T + b_in[:, :C]) * scale             # (1, C)
    wk_t = (win[C:2 * C] @ params["wkc"]).T                            # (C, C)
    bk = params["bkc"] @ win[C:2 * C].T + b_in[:, C:2 * C]             # (1, C)
    wv_t = (win[2 * C:] @ params["wvc"]).T                             # (C, C)
    bv = params["bvc"] @ win[2 * C:].T + b_in[:, 2 * C:]               # (1, C)
    # Pack K|V into one projection -> a single matmul on the key/value tokens.
    wkv_t = jnp.concatenate([wk_t, wv_t], axis=1)                      # (C, 2C)
    bkv = jnp.concatenate([bk, bv], axis=1)                            # (1, 2C)
    # Fold the MHA out_proj into out_proj_att; pre-sum all output biases.
    watt_t = (params["woatt"] @ params["womha"]).T                     # (C, O)
    woq_t = params["woq"].T                                            # (C, O)
    b_out = (params["bomha"] @ params["woatt"].T
             + params["boatt"] + params["boq"])                        # (1, O)

    # Grid-invariant per-head channel mask, built once on the host side.
    head_mask = (jnp.arange(C)[None, :] // hd
                 == jnp.arange(num_heads)[:, None]).astype(compute_dtype)  # (nh, C)

    cdt = compute_dtype
    xq, xkv, pe = xq.astype(cdt), xkv.astype(cdt), pe.astype(cdt)
    wq_t, bq = wq_t.astype(cdt), bq.astype(cdt)
    wkv_t, bkv = wkv_t.astype(cdt), bkv.astype(cdt)
    watt_t, woq_t = watt_t.astype(cdt), woq_t.astype(cdt)
    b_out = b_out.astype(jnp.float32)   # added to the f32 accumulator in-kernel

    def full(shape):
        return pl.BlockSpec(shape, lambda b, _n=len(shape): (0,) * _n)

    x_spec = pl.BlockSpec((1, S, C), lambda b: (b, 0, 0))

    out = pl.pallas_call(
        functools.partial(_cross_attn_kernel, num_heads=num_heads),
        out_shape=jax.ShapeDtypeStruct((B, 1, O), jnp.float32),
        grid=(B,),
        in_specs=[
            x_spec, x_spec,
            full((S, C)),                          # positional encoding (grid-invariant)
            full((num_heads, C)),                  # head-channel mask (grid-invariant)
            full((C, C)), full((1, C)),            # folded, scaled Q projection
            full((C, 2 * C)), full((1, 2 * C)),    # packed K|V projection
            full((C, O)),                          # out_proj_att . MHA out_proj
            full((C, O)),                          # out_proj_q
            full((1, O)),                          # pre-summed output bias (f32)
        ],
        out_specs=pl.BlockSpec((1, 1, O), lambda b: (b, 0, 0)),
        compiler_params=pltpu.CompilerParams(
            dimension_semantics=("parallel",),
            vmem_limit_bytes=32 * 1024 * 1024,
        ),
    )(xq, xkv, pe, head_mask, wq_t, bq, wkv_t, bkv, watt_t, woq_t, b_out)
    return out.reshape(B, O)


def reference(feat_q, feat_kv, params, num_heads=8):
    """Pure-JAX reference of the PyTorch forward (dropout=0, eval semantics)."""
    B, C, H, W = feat_q.shape
    S = H * W
    hd = C // num_heads
    pe = make_pe(C, H, W)[None]
    fq = (feat_q + pe).transpose(0, 2, 3, 1).reshape(B, S, C)
    fkv = (feat_kv + pe).transpose(0, 2, 3, 1).reshape(B, S, C)
    q = fq @ params["wqc"].T + params["bqc"]
    k = fkv @ params["wkc"].T + params["bkc"]
    v = fkv @ params["wvc"].T + params["bvc"]
    win, bin_ = params["win"], params["bin"][0]
    q2 = (q @ win[:C].T + bin_[:C]).reshape(B, S, num_heads, hd)
    k2 = (k @ win[C:2 * C].T + bin_[C:2 * C]).reshape(B, S, num_heads, hd)
    v2 = (v @ win[2 * C:].T + bin_[2 * C:]).reshape(B, S, num_heads, hd)
    s = jnp.einsum("bqnd,bknd->bnqk", q2, k2) / math.sqrt(hd)
    p = jax.nn.softmax(s, axis=-1)
    o = jnp.einsum("bnqk,bknd->bqnd", p, v2).reshape(B, S, C)
    attn_out = o @ params["womha"].T + params["bomha"]
    fused = (attn_out @ params["woatt"].T + params["boatt"]
             + fq @ params["woq"].T + params["boq"])
    return fused.mean(axis=1)


if __name__ == "__main__":
    B, C, H, W = 2, 32, 8, 8        # in_dim = 32 (divisible by 4 and by num_heads)
    out_dim, num_heads = 16, 8
    key = jax.random.PRNGKey(0)
    ks = jax.random.split(key, 16)

    def w(k, shape, s=0.1):
        return s * jax.random.normal(k, shape, jnp.float32)

    # TODO(synk): dropout (p=0.0 here) is a no-op in eval mode and is not implemented.
    params = {
        "wqc": w(ks[0], (C, C)), "bqc": w(ks[1], (1, C)),
        "wkc": w(ks[2], (C, C)), "bkc": w(ks[3], (1, C)),
        "wvc": w(ks[4], (C, C)), "bvc": w(ks[5], (1, C)),
        "win": w(ks[6], (3 * C, C)), "bin": w(ks[7], (1, 3 * C)),
        "womha": w(ks[8], (C, C)), "bomha": w(ks[9], (1, C)),
        "woatt": w(ks[10], (out_dim, C)), "boatt": w(ks[11], (1, out_dim)),
        "woq": w(ks[12], (out_dim, C)), "boq": w(ks[13], (1, out_dim)),
    }
    feat_q = jax.random.normal(ks[14], (B, C, H, W), jnp.float32)
    feat_kv = jax.random.normal(ks[15], (B, C, H, W), jnp.float32)

    ref = reference(feat_q, feat_kv, params, num_heads)

    # f32 path: tight check against the unfused reference.
    out = cross_attention_images(feat_q, feat_kv, params, num_heads)
    out = jax.block_until_ready(out)
    assert out.shape == (B, out_dim)
    assert jnp.allclose(out, ref, atol=2e-3, rtol=2e-3), (out, ref)

    # bf16 matmul path (f32 softmax stats / accumulation): loose check.
    out_bf16 = cross_attention_images(feat_q, feat_kv, params, num_heads,
                                      compute_dtype=jnp.bfloat16)
    out_bf16 = jax.block_until_ready(out_bf16)
    assert jnp.allclose(out_bf16, ref, atol=5e-2, rtol=5e-2), (out_bf16, ref)

    print("KERNEL_OK")
</pallas_src>

<mosaic_0001>
module attributes {stable_mosaic.version = 11 : i64} {
  func.func @_cross_attn_kernel(%arg0: i32, %arg1: memref<1x64x32xf32, #tpu.memory_space<vmem>>, %arg2: memref<1x64x32xf32, #tpu.memory_space<vmem>>, %arg3: memref<64x32xf32, #tpu.memory_space<vmem>>, %arg4: memref<8x32xf32, #tpu.memory_space<vmem>>, %arg5: memref<32x32xf32, #tpu.memory_space<vmem>>, %arg6: memref<1x32xf32, #tpu.memory_space<vmem>>, %arg7: memref<32x64xf32, #tpu.memory_space<vmem>>, %arg8: memref<1x64xf32, #tpu.memory_space<vmem>>, %arg9: memref<32x16xf32, #tpu.memory_space<vmem>>, %arg10: memref<32x16xf32, #tpu.memory_space<vmem>>, %arg11: memref<1x16xf32, #tpu.memory_space<vmem>>, %arg12: memref<1x1x16xf32, #tpu.memory_space<vmem>>) attributes {dimension_semantics = [#tpu.dimension_semantics<parallel>], iteration_bounds = array<i64: 2>, scalar_prefetch = 0 : i64, scratch_operands = 0 : i64, tpu.core_type = #tpu.core_type<tc>, window_params = [{transform_indices = @transform_0, window_bounds = array<i64: 1, 64, 32>}, {transform_indices = @transform_1, window_bounds = array<i64: 1, 64, 32>}, {pipeline_mode = #tpu.pipeline_mode<synchronous>, transform_indices = @transform_2, window_bounds = array<i64: 64, 32>}, {pipeline_mode = #tpu.pipeline_mode<synchronous>, transform_indices = @transform_3, window_bounds = array<i64: 8, 32>}, {pipeline_mode = #tpu.pipeline_mode<synchronous>, transform_indices = @transform_4, window_bounds = array<i64: 32, 32>}, {pipeline_mode = #tpu.pipeline_mode<synchronous>, transform_indices = @transform_5, window_bounds = array<i64: 1, 32>}, {pipeline_mode = #tpu.pipeline_mode<synchronous>, transform_indices = @transform_6, window_bounds = array<i64: 32, 64>}, {pipeline_mode = #tpu.pipeline_mode<synchronous>, transform_indices = @transform_7, window_bounds = array<i64: 1, 64>}, {pipeline_mode = #tpu.pipeline_mode<synchronous>, transform_indices = @transform_8, window_bounds = array<i64: 32, 16>}, {pipeline_mode = #tpu.pipeline_mode<synchronous>, transform_indices = @transform_9, window_bounds = array<i64: 32, 16>}, {pipeline_mode = #tpu.pipeline_mode<synchronous>, transform_indices = @transform_10, window_bounds = array<i64: 1, 16>}, {transform_indices = @transform_11, window_bounds = array<i64: 1, 1, 16>}]} {
    %c0 = arith.constant 0 : index
    %c0_0 = arith.constant 0 : index
    %0 = vector.load %arg3[%c0, %c0_0] : memref<64x32xf32, #tpu.memory_space<vmem>>, vector<64x32xf32>
    %c0_1 = arith.constant 0 : index
    %c0_2 = arith.constant 0 : index
    %c0_3 = arith.constant 0 : index
    %1 = vector.load %arg1[%c0_1, %c0_2, %c0_3] : memref<1x64x32xf32, #tpu.memory_space<vmem>>, vector<1x64x32xf32>
    %2 = vector.shape_cast %1 : vector<1x64x32xf32> to vector<64x32xf32>
    %3 = arith.addf %2, %0 : vector<64x32xf32>
    %c0_4 = arith.constant 0 : index
    %c0_5 = arith.constant 0 : index
    %c0_6 = arith.constant 0 : index
    %4 = vector.load %arg2[%c0_4, %c0_5, %c0_6] : memref<1x64x32xf32, #tpu.memory_space<vmem>>, vector<1x64x32xf32>
    %5 = vector.shape_cast %4 : vector<1x64x32xf32> to vector<64x32xf32>
    %6 = arith.addf %5, %0 : vector<64x32xf32>
    %c0_7 = arith.constant 0 : index
    %c0_8 = arith.constant 0 : index
    %7 = vector.load %arg5[%c0_7, %c0_8] : memref<32x32xf32, #tpu.memory_space<vmem>>, vector<32x32xf32>
    %cst = arith.constant dense<0.000000e+00> : vector<64x32xf32>
    %8 = tpu.matmul %3, %7, %cst {dimension_numbers = #tpu.dot_dimension_numbers<[1], [0], [0], [1], [0, 0, 1, 1], [], []>} : vector<64x32xf32>, vector<32x32xf32>, vector<64x32xf32> -> vector<64x32xf32>
    %c0_9 = arith.constant 0 : index
    %c0_10 = arith.constant 0 : index
    %9 = vector.load %arg6[%c0_9, %c0_10] : memref<1x32xf32, #tpu.memory_space<vmem>>, vector<1x32xf32>
    %10 = vector.broadcast %9 : vector<1x32xf32> to vector<64x32xf32>
    %11 = arith.addf %8, %10 : vector<64x32xf32>
    %c0_11 = arith.constant 0 : index
    %c0_12 = arith.constant 0 : index
    %12 = vector.load %arg7[%c0_11, %c0_12] : memref<32x64xf32, #tpu.memory_space<vmem>>, vector<32x64xf32>
    %cst_13 = arith.constant dense<0.000000e+00> : vector<64x64xf32>
    %13 = tpu.matmul %6, %12, %cst_13 {dimension_numbers = #tpu.dot_dimension_numbers<[1], [0], [0], [1], [0, 0, 1, 1], [], []>} : vector<64x32xf32>, vector<32x64xf32>, vector<64x64xf32> -> vector<64x64xf32>
    %c0_14 = arith.constant 0 : index
    %c0_15 = arith.constant 0 : index
    %14 = vector.load %arg8[%c0_14, %c0_15] : memref<1x64xf32, #tpu.memory_space<vmem>>, vector<1x64xf32>
    %15 = vector.broadcast %14 : vector<1x64xf32> to vector<64x64xf32>
    %16 = arith.addf %13, %15 : vector<64x64xf32>
    %17 = vector.extract_strided_slice %16 {offsets = [0, 0], sizes = [64, 32], strides = [1, 1]} : vector<64x64xf32> to vector<64x32xf32>
    %18 = vector.extract_strided_slice %16 {offsets = [0, 32], sizes = [64, 32], strides = [1, 1]} : vector<64x64xf32> to vector<64x32xf32>
    %c0_16 = arith.constant 0 : index
    %c0_17 = arith.constant 0 : index
    %19 = vector.load %arg4[%c0_16, %c0_17] : memref<8x32xf32, #tpu.memory_space<vmem>>, vector<8x32xf32>
    %20 = vector.shape_cast %11 : vector<64x32xf32> to vector<1x64x32xf32>
    %21 = vector.shape_cast %19 : vector<8x32xf32> to vector<8x1x32xf32>
    %22 = vector.broadcast %20 : vector<1x64x32xf32> to vector<8x64x32xf32>
    %23 = vector.broadcast %21 : vector<8x1x32xf32> to vector<8x64x32xf32>
    %24 = arith.mulf %22, %23 : vector<8x64x32xf32>
    %25 = vector.shape_cast %24 : vector<8x64x32xf32> to vector<512x32xf32>
    %cst_18 = arith.constant dense<0.000000e+00> : vector<512x64xf32>
    %26 = tpu.matmul %25, %17, %cst_18 {dimension_numbers = #tpu.dot_dimension_numbers<[1], [1], [0], [0], [0, 0, 1, 0], [], []>} : vector<512x32xf32>, vector<64x32xf32>, vector<512x64xf32> -> vector<512x64xf32>
    %cst_19 = arith.constant dense<0xFF800000> : vector<512xf32>
    %27 = vector.multi_reduction <maximumf>, %26, %cst_19 [1] : vector<512x64xf32> to vector<512xf32>
    %28 = vector.shape_cast %27 : vector<512xf32> to vector<512x1xf32>
    %29 = vector.broadcast %28 : vector<512x1xf32> to vector<512x64xf32>
    %30 = arith.subf %26, %29 : vector<512x64xf32>
    %31 = math.exp %30 : vector<512x64xf32>
    %cst_20 = arith.constant dense<0.000000e+00> : vector<512xf32>
    %32 = vector.multi_reduction <add>, %31, %cst_20 [1] : vector<512x64xf32> to vector<512xf32>
    %33 = vector.shape_cast %32 : vector<512xf32> to vector<512x1xf32>
    %34 = tpu.reciprocal %33 {approx = true} : vector<512x1xf32> -> vector<512x1xf32>
    %35 = vector.broadcast %34 : vector<512x1xf32> to vector<512x64xf32>
    %36 = arith.mulf %31, %35 : vector<512x64xf32>
    %37 = vector.shape_cast %36 : vector<512x64xf32> to vector<8x64x64xf32>
    %cst_21 = arith.constant dense<0.000000e+00> : vector<8x64xf32>
    %38 = vector.multi_reduction <add>, %37, %cst_21 [1] : vector<8x64x64xf32> to vector<8x64xf32>
    %cst_22 = arith.constant dense<0.000000e+00> : vector<8x32xf32>
    %39 = tpu.matmul %38, %18, %cst_22 {dimension_numbers = #tpu.dot_dimension_numbers<[1], [0], [0], [1], [0, 0, 1, 1], [], []>} : vector<8x64xf32>, vector<64x32xf32>, vector<8x32xf32> -> vector<8x32xf32>
    %40 = arith.mulf %39, %19 : vector<8x32xf32>
    %cst_23 = arith.constant dense<0.000000e+00> : vector<32xf32>
    %41 = vector.multi_reduction <add>, %40, %cst_23 [0] : vector<8x32xf32> to vector<32xf32>
    %42 = vector.shape_cast %41 : vector<32xf32> to vector<1x32xf32>
    %cst_24 = arith.constant 1.562500e-02 : f32
    %43 = vector.broadcast %cst_24 : f32 to vector<1x32xf32>
    %44 = arith.mulf %42, %43 : vector<1x32xf32>
    %cst_25 = arith.constant dense<0.000000e+00> : vector<32xf32>
    %45 = vector.multi_reduction <add>, %3, %cst_25 [0] : vector<64x32xf32> to vector<32xf32>
    %46 = vector.shape_cast %45 : vector<32xf32> to vector<1x32xf32>
    %cst_26 = arith.constant 1.562500e-02 : f32
    %47 = vector.broadcast %cst_26 : f32 to vector<1x32xf32>
    %48 = arith.mulf %46, %47 : vector<1x32xf32>
    %c0_27 = arith.constant 0 : index
    %c0_28 = arith.constant 0 : index
    %49 = vector.load %arg9[%c0_27, %c0_28] : memref<32x16xf32, #tpu.memory_space<vmem>>, vector<32x16xf32>
    %cst_29 = arith.constant dense<0.000000e+00> : vector<1x16xf32>
    %50 = tpu.matmul %44, %49, %cst_29 {dimension_numbers = #tpu.dot_dimension_numbers<[1], [0], [0], [1], [0, 0, 1, 1], [], []>} : vector<1x32xf32>, vector<32x16xf32>, vector<1x16xf32> -> vector<1x16xf32>
    %c0_30 = arith.constant 0 : index
    %c0_31 = arith.constant 0 : index
    %51 = vector.load %arg10[%c0_30, %c0_31] : memref<32x16xf32, #tpu.memory_space<vmem>>, vector<32x16xf32>
    %cst_32 = arith.constant dense<0.000000e+00> : vector<1x16xf32>
    %52 = tpu.matmul %48, %51, %cst_32 {dimension_numbers = #tpu.dot_dimension_numbers<[1], [0], [0], [1], [0, 0, 1, 1], [], []>} : vector<1x32xf32>, vector<32x16xf32>, vector<1x16xf32> -> vector<1x16xf32>
    %53 = arith.addf %50, %52 : vector<1x16xf32>
    %c0_33 = arith.constant 0 : index
    %c0_34 = arith.constant 0 : index
    %54 = vector.load %arg11[%c0_33, %c0_34] : memref<1x16xf32, #tpu.memory_space<vmem>>, vector<1x16xf32>
    %55 = arith.addf %53, %54 : vector<1x16xf32>
    %c0_35 = arith.constant 0 : index
    %c0_36 = arith.constant 0 : index
    %c0_37 = arith.constant 0 : index
    %56 = vector.load %arg12[%c0_35, %c0_36, %c0_37] : memref<1x1x16xf32, #tpu.memory_space<vmem>>, vector<1x1x16xf32>
    %57 = vector.shape_cast %56 : vector<1x1x16xf32> to vector<1x16xf32>
    %58 = vector.shape_cast %55 : vector<1x16xf32> to vector<1x1x16xf32>
    tpu.vector_store %arg12[%c0_35, %c0_36, %c0_37], %58 {strides = array<i32>} : memref<1x1x16xf32, #tpu.memory_space<vmem>>, vector<1x1x16xf32>,
    return
  }
  func.func @transform_0(%arg0: i32) -> (i32, i32, i32) {
    %c0_i32 = arith.constant 0 : i32
    %c0_i32_0 = arith.constant 0 : i32
    %c0_i32_1 = arith.constant 0 : i32
    return %arg0, %c0_i32, %c0_i32_0 : i32, i32, i32
  }
  func.func @transform_1(%arg0: i32) -> (i32, i32, i32) {
    %c0_i32 = arith.constant 0 : i32
    %c0_i32_0 = arith.constant 0 : i32
    %c0_i32_1 = arith.constant 0 : i32
    return %arg0, %c0_i32, %c0_i32_0 : i32, i32, i32
  }
  func.func @transform_2(%arg0: i32) -> (i32, i32) {
    %c0_i32 = arith.constant 0 : i32
    %c0_i32_0 = arith.constant 0 : i32
    %c0_i32_1 = arith.constant 0 : i32
    return %c0_i32, %c0_i32_0 : i32, i32
  }
  func.func @transform_3(%arg0: i32) -> (i32, i32) {
    %c0_i32 = arith.constant 0 : i32
    %c0_i32_0 = arith.constant 0 : i32
    %c0_i32_1 = arith.constant 0 : i32
    return %c0_i32, %c0_i32_0 : i32, i32
  }
  func.func @transform_4(%arg0: i32) -> (i32, i32) {
    %c0_i32 = arith.constant 0 : i32
    %c0_i32_0 = arith.constant 0 : i32
    %c0_i32_1 = arith.constant 0 : i32
    return %c0_i32, %c0_i32_0 : i32, i32
  }
  func.func @transform_5(%arg0: i32) -> (i32, i32) {
    %c0_i32 = arith.constant 0 : i32
    %c0_i32_0 = arith.constant 0 : i32
    %c0_i32_1 = arith.constant 0 : i32
    return %c0_i32, %c0_i32_0 : i32, i32
  }
  func.func @transform_6(%arg0: i32) -> (i32, i32) {
    %c0_i32 = arith.constant 0 : i32
    %c0_i32_0 = arith.constant 0 : i32
    %c0_i32_1 = arith.constant 0 : i32
    return %c0_i32, %c0_i32_0 : i32, i32
  }
  func.func @transform_7(%arg0: i32) -> (i32, i32) {
    %c0_i32 = arith.constant 0 : i32
    %c0_i32_0 = arith.constant 0 : i32
    %c0_i32_1 = arith.constant 0 : i32
    return %c0_i32, %c0_i32_0 : i32, i32
  }
  func.func @transform_8(%arg0: i32) -> (i32, i32) {
    %c0_i32 = arith.constant 0 : i32
    %c0_i32_0 = arith.constant 0 : i32
    %c0_i32_1 = arith.constant 0 : i32
    return %c0_i32, %c0_i32_0 : i32, i32
  }
  func.func @transform_9(%arg0: i32) -> (i32, i32) {
    %c0_i32 = arith.constant 0 : i32
    %c0_i32_0 = arith.constant 0 : i32
    %c0_i32_1 = arith.constant 0 : i32
    return %c0_i32, %c0_i32_0 : i32, i32
  }
  func.func @transform_10(%arg0: i32) -> (i32, i32) {
    %c0_i32 = arith.constant 0 : i32
    %c0_i32_0 = arith.constant 0 : i32
    %c0_i32_1 = arith.constant 0 : i32
    return %c0_i32, %c0_i32_0 : i32, i32
  }
  func.func @transform_11(%arg0: i32) -> (i32, i32, i32) {
    %c0_i32 = arith.constant 0 : i32
    %c0_i32_0 = arith.constant 0 : i32
    %c0_i32_1 = arith.constant 0 : i32
    return %arg0, %c0_i32, %c0_i32_0 : i32, i32, i32
  }
}

</mosaic_0001>

<bundles_post_ra>
// kernel: tpu_custom_call.1
= control target key start
LH: loop header
LB: loop body
LE: loop exit
PB: predicated region body
PF: predicated region fallthrough
CT: control target
= control target key end

     0   :  { %16 = vsyncpa [#allocation3], 0  ;;  %s4979_s0 = inlined_call_operand.vmem [shape: f32[2,64,32], index: 0, kind: input, shape index: {}]   ;;  %s4980_s1 = inlined_call_operand.vmem [shape: f32[2,64,32], index: 1, kind: input, shape index: {}]   ;;  %s4981_s2 = inlined_call_operand.vmem [shape: f32[64,32], index: 2, kind: input, shape index: {}]   ;;  %s4982_s3 = inlined_call_operand.vmem [shape: f32[8,32], index: 3, kind: input, shape index: {}]   ;;  %s4983_s4 = inlined_call_operand.vmem [shape: f32[32,32], index: 4, kind: input, shape index: {}]   ;;  %s4984_s5 = inlined_call_operand.vmem [shape: f32[1,32], index: 5, kind: input, shape index: {}]   ;;  %s4985_s6 = inlined_call_operand.vmem [shape: f32[32,64], index: 6, kind: input, shape index: {}]   ;;  %s4986_s7 = inlined_call_operand.vmem [shape: f32[1,64], index: 7, kind: input, shape index: {}]   ;;  %s4987_s8 = inlined_call_operand.vmem [shape: f32[32,16], index: 8, kind: input, shape index: {}]   ;;  %s4988_s9 = inlined_call_operand.vmem [shape: f32[32,16], index: 9, kind: input, shape index: {}]   ;;  %s4989_s10 = inlined_call_operand.vmem [shape: f32[1,16], index: 10, kind: input, shape index: {}]   ;;  %s4990_s11 = inlined_call_operand.hbm [shape: f32[2,1,16], index: 11, kind: output, shape index: {}]  }
   0x1   :  { %18 = vsyncpa [#allocation3 + $0x1], 0  ;;  %s3599_s17 = smov 0   ;;  %s3601_s18 = smov 0  }
   0x2   :  { %s3603_s19 = smov 0   ;;  %s3605_s20 = smov 0  }
   0x3 LB: > { %5032 = sst [smem:[#allocation5_spill]] %s3528_s19  ;;  %s3620_s21 = sadd.s32 4294967295, %s3532_s20   ;;  %s3532_s20 = sphi %s3605_s20, %s5117_s20   ;;  %s3528_s19 = sphi %s3603_s19, %s5114_s19   ;;  %s3524_s18 = sphi %s3601_s18, %s5116_s18   ;;  %s3520_s17 = sphi %s3599_s17, %s5115_s17  }
   0x4   : > { %s2741_s22 = sadd.s32 4294967294, %s3532_s20   ;;  %s3624_s23 = sadd.s32 1, %s3532_s20  }
   0x5   : > { %s272_s24 = sadd.s32 1, %s3528_s19  ;;  %s269_s25 = ssub.s32 %s3532_s20, %s3624_s23 }
   0x6   : > { %p282_p0 = scmp.ne.s32.totalorder %s3528_s19, %s3524_s18  ;;  %p270_p1 = scmp.eq.s32.totalorder %s269_s25, 0 }
   0x7   : > { %p283_p2 = scmp.eq.s32.totalorder %s3620_s21, 1  ;;  %p288_p3 = scmp.ne.s32.totalorder %s3524_s18, %s3520_s17 }
   0x8   : > { %p289_p4 = scmp.eq.s32.totalorder %s2741_s22, 1  ;;  %p2744_p7 = scmp.ge.s32.totalorder %s3532_s20, 1 }
   0x9   : > { %s3635_s26 = scalar_select %p270_p1, %s3528_s19, %s272_s24  }
   0xa   : > { %p3637_p5 = por %p283_p2, %p282_p0  ;;  %p3641_p6 = por %p289_p4, %p288_p3 }
   0xb   : > { %5033 = sst [smem:[#allocation6_spill]] %s3635_s26  ;;  %p350_p8 = scmp.lt.s32.totalorder %s3532_s20, 3 }
   0xd   : > { %p351_p9 = pnand %p2744_p7, %p350_p8 }
   0xf   : > { %354 = sbr.rel (%p351_p9) target bundleno = 1361 (0x551), region = 64 }
  0x14   : > { %v588_v0 = vld [vmem:[%s4985_s6 + $0x18] sm:$0xff]  ;;  %v587_v1 = vld [vmem:[%s4985_s6 + $0x10] sm:$0xff]  ;;  %p394_p10 = scmp.lt.s32.totalorder %s3620_s21, 1  ;;  %v586_v2 = vld [vmem:[%s4985_s6 + $0x8] sm:$0xff]  ;;  %vm455_vm0 = vcmask 261120   ;;  %vm1481_vm1 = vcmask 523264  }
  0x15   : > { %2982 = vmatprep.subr.mxu1 %v588_v0  ;;  %v585_v3 = vld [vmem:[%s4985_s6] sm:$0xff]  ;;  %v405_v5 = vld [vmem:[%s4981_s2 + $0x8] sm:$0xff]  ;;  %v406_v6 = vld [vmem:[%s4981_s2 + $0x10] sm:$0xff]  ;;  %v3534_v63 = vmov 1966171168   ;;  %s3536_s19 = smov 96  }
  0x16   : > { %2983 = vmatpush3.msra.mxu1 %v588_v0  ;;  %s395_s16 = scalar_select %p394_p10, %s3620_s21, 1  ;;  %v404_v4 = vld [vmem:[%s4981_s2] sm:$0xff]  ;;  %v447_v7 = vld [vmem:[%s4983_s4 + $0x18] sm:$0xff]  ;;  %v446_v8 = vld [vmem:[%s4983_s4 + $0x10] sm:$0xff]  ;;  %v729_v0 = vunpack.c.l.s4 %v3534_v63  ;;  %vm3537_vm2 = vmmov 0   ;;  %vm2362_vm3 = vcmask 1041409  }
  0x17   : > { %2984 = vmatprep.subr.mxu1 %v587_v1  ;;  %2962 = vmatprep.subr.mxu0 %v447_v7  ;;  %v445_v9 = vld [vmem:[%s4983_s4 + $0x8] sm:$0xff]  ;;  %v407_v16 = vld [vmem:[%s4981_s2 + $0x18] sm:$0xff]  ;;  %v408_v18 = vld [vmem:[%s4981_s2 + $0x20] sm:$0xff]  ;;  %vm2364_vm4 = vcmask 1042434   ;;  %vm2366_vm5 = vcmask 1043459   ;;  %vm2368_vm6 = vcmask 1044484  }
  0x18   : > { %2985 = vmatpush3.msra.mxu1 %v587_v1  ;;  %s2845_s13 = sshll.u32 %s395_s16, 6  ;;  %2963 = vmatpush3.msra.mxu0 %v447_v7  ;;  %v444_v20 = vld [vmem:[%s4983_s4] sm:$0xff]  ;;  %v409_v30 = vld [vmem:[%s4981_s2 + $0x28] sm:$0xff]  ;;  %v410_v34 = vld [vmem:[%s4981_s2 + $0x30] sm:$0xff]  ;;  %v731_v1 = vlaneseq  ;;  %vm2370_vm7 = vcmask 1045509   ;;  %vm2372_vm8 = vcmask 1046534  }
  0x19   : > { %2986 = vmatprep.subr.mxu1 %v586_v2  ;;  %s3679_s30 = scalar_lea.vmem %s4980_s1, %s2845_s13  ;;  %s3687_s14 = scalar_lea.vmem %s4979_s0, %s2845_s13  ;;  %2964 = vmatprep.subr.mxu0 %v446_v8  ;;  %v411_v45 = vld [vmem:[%s4981_s2 + $0x38] sm:$0xff]  ;;  %vm2374_vm9 = vcmask 1047559   ;;  %vm2659_vm10 = vcmask 122880  }
  0x1a   : > { %2987 = vmatpush3.msra.mxu1 %v586_v2  ;;  %v428_v10 = vld [vmem:[%s3679_s30] sm:$0xff]  ;;  %v429_v11 = vld [vmem:[%s3679_s30 + $0x8] sm:$0xff]  ;;  %v430_v12 = vld [vmem:[%s3679_s30 + $0x10] sm:$0xff]  ;;  %2965 = vmatpush3.msra.mxu0 %v446_v8  ;;  %v730_v2 = vunpack.c.0.s8 %v729_v0  ;;  %s2842_s25 = sshll.u32 %s3620_s21, 4 }
  0x1b   : > { %2988 = vmatprep.subr.mxu1 %v585_v3  ;;  %v436_v13 = vadd.f32 %v428_v10, %v404_v4  ;;  %v437_v14 = vadd.f32 %v429_v11, %v405_v5  ;;  %v438_v15 = vadd.f32 %v430_v12, %v406_v6  ;;  %v431_v17 = vld [vmem:[%s3679_s30 + $0x18] sm:$0xff]  ;;  %v432_v19 = vld [vmem:[%s3679_s30 + $0x20] sm:$0xff]  ;;  %2966 = vmatprep.subr.mxu0 %v445_v9  ;;  %v413_v22 = vld [vmem:[%s3687_s14 + $0x8] sm:$0xff]  ;;  %s2672_s12 = scalar_lea.hbm %s4990_s11, %s2842_s25 }
  0x1c   : > { %2989 = vmatpush3.msra.mxu1 %v585_v3  ;;  %v412_v21 = vld [vmem:[%s3687_s14] sm:$0xff]  ;;  %v414_v23 = vld [vmem:[%s3687_s14 + $0x10] sm:$0xff]  ;;  %v415_v25 = vld [vmem:[%s3687_s14 + $0x18] sm:$0xff]  ;;  %v439_v26 = vadd.f32 %v431_v17, %v407_v16  ;;  %2967 = vmatpush3.msra.mxu0 %v445_v9  ;;  %v421_v27 = vadd.f32 %v413_v22, %v405_v5  ;;  %v440_v29 = vadd.f32 %v432_v19, %v408_v18  ;;  %v732_v3 = vshrl.u32 %v731_v1, 7 }
  0x1d   : > { %2990 = vmatprep.mubr.msk.f32.mxu1 %vm455_vm0, %v436_v13  ;;  %v420_v24 = vadd.f32 %v412_v21, %v404_v4  ;;  %v422_v28 = vadd.f32 %v414_v23, %v406_v6  ;;  %v433_v31 = vld [vmem:[%s3679_s30 + $0x28] sm:$0xff]  ;;  %2968 = vmatprep.subr.mxu0 %v444_v20  ;;  %v416_v33 = vld [vmem:[%s3687_s14 + $0x20] sm:$0xff]  ;;  %v434_v35 = vld [vmem:[%s3679_s30 + $0x30] sm:$0xff]  ;;  %v423_v38 = vadd.f32 %v415_v25, %v407_v16 }
  0x1e   : > { %2991 = vmatmul.mubr.msk.f32.vlgmr.msra.gmra.mxu1 %vm455_vm0, %v437_v14  ;;  %2969 = vmatpush3.msra.mxu0 %v444_v20  ;;  %v2482_v36 = vsel %vm455_vm0, %v421_v27, 0.0  ;;  %v417_v40 = vld [vmem:[%s3687_s14 + $0x28] sm:$0xff]  ;;  %v441_v41 = vadd.f32 %v433_v31, %v409_v30  ;;  %v424_v43 = vadd.f32 %v416_v33, %v408_v18  ;;  %v442_v44 = vadd.f32 %v434_v35, %v410_v34  ;;  %v435_v46 = vld [vmem:[%s3679_s30 + $0x38] sm:$0xff]  ;;  %v418_v48 = vld [vmem:[%s3687_s14 + $0x30] sm:$0xff]  ;;  %s3538_s30 = smov [#allocation2]  }
  0x1f   : > { %2993 = vmatprep.mubr.msk.f32.mxu1 %vm455_vm0, %v438_v15  ;;  %v2481_v32 = vsel %vm455_vm0, %v420_v24, 0.0  ;;  %2970 = vmatprep.mubr.msk.f32.mxu0 %vm455_vm0, %v420_v24  ;;  %v2484_v37 = vsel %vm455_vm0, %v422_v28, 0.0  ;;  %v2486_v42 = vsel %vm455_vm0, %v423_v38, 0.0  ;;  %v425_v50 = vadd.f32 %v417_v40, %v409_v30  ;;  %v419_v52 = vld [vmem:[%s3687_s14 + $0x38] sm:$0xff]  ;;  %v725_v5 = vld [vmem:[%s4982_s3] sm:$0xff]  ;;  %s392_s14 = sand.u32 1, %s3524_s18  }
  0x20   : > { %v2483_v39 = vadd.f32 %v2482_v36, %v2481_v32  ;;  %2971 = vmatmul.mubr.msk.f32.vlgmr.msra.gmra.mxu0 %vm455_vm0, %v421_v27  ;;  %v2488_v49 = vsel %vm455_vm0, %v424_v43, 0.0  ;;  %v443_v53 = vadd.f32 %v435_v46, %v411_v45  ;;  %v426_v55 = vadd.f32 %v418_v48, %v410_v34  ;;  %v3768_v19 = vld [vmem:[%s4984_s5] ss:$0 sm:$0xff]  ;;  %s393_s29 = scalar_lea.vmem [#allocation2], %s392_s14  ;;  %s2662_s15 = scalar_lea.sflag [#allocation3], %s392_s14 }
  0x21   : > { %2973 = vmatprep.mubr.msk.f32.mxu0 %vm455_vm0, %v422_v28  ;;  %v2490_v54 = vsel %vm455_vm0, %v425_v50, 0.0  ;;  %v427_v58 = vadd.f32 %v419_v52, %v411_v45  ;;  %v733_v4 = vsub.s32 %v730_v2, %v732_v3  ;;  %v3752_v8 = vsub.s32 0, %v732_v3  ;;  %v2758_v36 = vld [vmem:[%s4986_s7] ss:$0 sm:$0xff]  ;;  %s3476_s21 = sshll.u32 %s3538_s30, 4  ;;  %s3477_s21 = int_to_ptr.vmem [resolvable:$false] %s3476_s21 }
  0x22   : > { %2994 = vmatmul.mubr.msk.f32.gmra.mxu1 %vm455_vm0, %v439_v26  ;;  %v2485_v47 = vadd.f32 %v2484_v37, %v2483_v39  ;;  %v2492_v57 = vsel %vm455_vm0, %v426_v55, 0.0  ;;  %v727_v11 = vcombine.high %v725_v5, %v725_v5  ;;  %s3478_s13 = scalar_lea.vmem %s3477_s21, 32 }
  0x23   : > { %2996 = vmatprep.mubr.msk.f32.mxu1 %vm455_vm0, %v440_v29  ;;  %v2494_v60 = vsel %vm455_vm0, %v427_v58, 0.0  ;;  %v734_v6 = vrot.slane %v725_v5, %v733_v4 }
  0x24   : > { %2974 = vmatmul.mubr.msk.f32.gmra.mxu0 %vm455_vm0, %v423_v38  ;;  %v2487_v51 = vadd.f32 %v2486_v42, %v2485_v47  ;;  %v741_v12 = vrot.slane %v727_v11, %v733_v4 }
  0x25   : > { %2976 = vmatprep.mubr.msk.f32.mxu0 %vm455_vm0, %v424_v43  ;;  %v750_v7 = vrot.slane %v734_v6, %v733_v4  ;;  %v742_v26 = vcombine.high %v734_v6, %v734_v6 }
  0x26   : > { %2997 = vmatmul.mubr.msk.f32.gmra.mxu1 %vm455_vm0, %v441_v41  ;;  %v2489_v56 = vadd.f32 %v2488_v49, %v2487_v51  ;;  %v743_v13 = vcombine.high %v741_v12, %v741_v12 }
  0x27   : > { %2999 = vmatprep.mubr.msk.f32.mxu1 %vm455_vm0, %v442_v44  ;;  %v772_v9 = vcombine.high %v750_v7, %v750_v7  ;;  %v3773_v21 = vrot.slane %v750_v7, %v3752_v8  ;;  %v3794_v34 = vrot.slane %v742_v26, %v733_v4  ;;  %v3813_v44 = vrot.slane %v741_v12, %v733_v4 }
  0x28   : > { %2977 = vmatmul.mubr.msk.f32.gmra.mxu0 %vm455_vm0, %v425_v50  ;;  %v2491_v59 = vadd.f32 %v2490_v54, %v2489_v56  ;;  %v3757_v14 = vrot.slane %v743_v13, %v733_v4 }
  0x29   : > { %2979 = vmatprep.mubr.msk.f32.mxu0 %vm455_vm0, %v426_v55  ;;  %v3755_v10 = vrot.slane %v772_v9, %v3752_v8  ;;  %v774_v41 = vcombine.high %v3794_v34, %v3794_v34  ;;  %v795_v47 = vrot.slane %v3813_v44, %v3752_v8 }
  0x2a   : > { %3000 = vmatmul.mubr.msk.f32.gmra.mxu1 %vm455_vm0, %v443_v53  ;;  %v2493_v61 = vadd.f32 %v2492_v57, %v2491_v59  ;;  %v775_v16 = vcombine.high %v3757_v14, %v3757_v14  ;;  %v799_v11 = vrot.slane %v3757_v14, %v3752_v8 }
  0x2b   : > { %v3825_v48 = vrot.slane %v774_v41, %v3752_v8 }
  0x2c   : > { %2980 = vmatmul.mubr.msk.f32.gmra.mxu0 %vm455_vm0, %v427_v58  ;;  %v3747_v62 = vadd.f32 %v2494_v60, %v2493_v61  ;;  %v3776_v23 = vrot.slane %v775_v16, %v3752_v8 }
  0x2e   : > { %5036 = vst [vmem:[#allocation7_spill] sm:$0xff] %v3747_v62 }
  0xde   : > { %v3759_v15 = vpop.f32.mrf.mxu1 }
  0xdf   : > { %v3921_v6 = vadd.f32 %v3759_v15, %v2758_v36 }
  0xe0   : > { %v3763_v17 = vpop.f32.mrf.mxu1  ;;  %v2972_v18 = vpop.f32.mrf.mxu0 }
  0xe1   : > { %v3834_v50 = vadd.f32 %v2972_v18, %v3768_v19  ;;  %5043 = vst [vmem:[#allocation14_spill] sm:$0xff] %v3921_v6  ;;  %v3932_v7 = vadd.f32 %v2758_v36, %v3763_v17 }
  0xe2   : > { %v3770_v20 = vpop.f32.mrf.mxu1  ;;  %v546_v22 = vpop.f32.mrf.mxu0 }
  0xe3   : > { %v3781_v25 = vadd.f32 %v3768_v19, %v546_v22  ;;  %v3884_v63 = vmul.f32 %v795_v47, %v3834_v50  ;;  %v3899_v4 = vadd.f32 %v3770_v20, %v2758_v36  ;;  %5044 = vst [vmem:[#allocation15_spill] sm:$0xff] %v3932_v7  ;;  %v817_v12 = vmul.f32 %v3773_v21, %v3834_v50 }
  0xe4   : > { %v3778_v24 = vpop.f32.mrf.mxu1  ;;  %v2975_v27 = vpop.f32.mrf.mxu0  ;;  %v857_v17 = vmul.f32 %v799_v11, %v3834_v50 }
  0xe5   : > { %v816_v29 = vmul.f32 %v3773_v21, %v3781_v25  ;;  %v3787_v31 = vmul.f32 %v3755_v10, %v3781_v25  ;;  %v3791_v32 = vmul.f32 %v3776_v23, %v3781_v25  ;;  %v3842_v52 = vadd.f32 %v2975_v27, %v3768_v19  ;;  %5041 = vst [vmem:[#allocation12_spill] sm:$0xff] %v3899_v4 }
  0xe6   : > { %v2998_v28 = vpop.f32.mrf.mxu1  ;;  %v556_v30 = vpop.f32.mrf.mxu0  ;;  %v3860_v57 = vmul.f32 %v3825_v48, %v3781_v25  ;;  %v3881_v61 = vmul.f32 %v795_v47, %v3781_v25  ;;  %v3910_v5 = vadd.f32 %v2758_v36, %v3778_v24  ;;  %v856_v16 = vmul.f32 %v799_v11, %v3781_v25 }
  0xe7   : > { %3018 = vmatprep.mubr.msk.f32.mxu0 %vm455_vm0, %v816_v29  ;;  %v3827_v49 = vadd.f32 %v2998_v28, %v2758_v36  ;;  %v3845_v53 = vadd.f32 %v3768_v19, %v556_v30  ;;  %v3890_v1 = vmul.f32 %v795_v47, %v3842_v52  ;;  %v819_v14 = vmul.f32 %v3773_v21, %v3842_v52 }
  0xe8   : > { %v706_v33 = vpop.f32.mrf.mxu1  ;;  %v2978_v35 = vpop.f32.mrf.mxu0  ;;  %5042 = vst [vmem:[#allocation13_spill] sm:$0xff] %v3910_v5  ;;  %v859_v22 = vmul.f32 %v799_v11, %v3842_v52  ;;  %v783_v27 = vrot.slane %v3794_v34, %v3752_v8  ;;  %v773_v28 = vcombine.high %v3813_v44, %v3813_v44 }
  0xe9   : > { %5039 = vst [vmem:[#allocation10_spill] sm:$0xff] %v3827_v49  ;;  %v3852_v55 = vadd.f32 %v2978_v35, %v3768_v19  ;;  %v3866_v59 = vadd.f32 %v2758_v36, %v706_v33  ;;  %v3887_v0 = vmul.f32 %v795_v47, %v3845_v53  ;;  %v818_v15 = vmul.f32 %v3773_v21, %v3845_v53 }
  0xea   : > { %v3001_v37 = vpop.f32.mrf.mxu1  ;;  %v566_v39 = vpop.f32.mrf.mxu0  ;;  %v824_v33 = vmul.f32 %v783_v27, %v3781_v25  ;;  %v803_v35 = vrot.slane %v773_v28, %v3752_v8  ;;  %v827_v8 = vmul.f32 %v783_v27, %v3842_v52 }
  0xeb   : > { %v3799_v38 = vadd.f32 %v3001_v37, %v2758_v36  ;;  %v3855_v56 = vadd.f32 %v3768_v19, %v566_v39  ;;  %5040 = vst [vmem:[#allocation11_spill] sm:$0xff] %v3866_v59  ;;  %v3896_v3 = vmul.f32 %v795_v47, %v3852_v55  ;;  %v821_v20 = vmul.f32 %v3773_v21, %v3852_v55 }
  0xec   : > { %v716_v40 = vpop.f32.mrf.mxu1  ;;  %v2981_v43 = vpop.f32.mrf.mxu0  ;;  %v861_v30 = vmul.f32 %v799_v11, %v3852_v55  ;;  %v826_v37 = vmul.f32 %v783_v27, %v3845_v53  ;;  %v864_v39 = vmul.f32 %v803_v35, %v3781_v25  ;;  %v829_v25 = vmul.f32 %v783_v27, %v3852_v55 }
  0xed   : > { %5037 = vst [vmem:[#allocation8_spill] sm:$0xff] %v3799_v38  ;;  %v3803_v42 = vadd.f32 %v2758_v36, %v716_v40  ;;  %3002 = vmatprep.subr.msk.mxu0 %vm455_vm0, %v3799_v38  ;;  %3155 = vmatprep.subr.msk.mxu1 %vm455_vm0, %v3799_v38  ;;  %v3893_v2 = vmul.f32 %v795_v47, %v3855_v56 }
  0xee   : > { %3003 = vmatpush3.xpose.msk.msra.mxu0 %vm455_vm0, %v3799_v38  ;;  %3163 = vmatpush3.xpose.msk.msra.mxu1 %vm455_vm0, %v3799_v38  ;;  %v576_v45 = vpop.f32.mrf.mxu0  ;;  %v3939_v9 = vadd.f32 %v2981_v43, %v3768_v19  ;;  %v820_v18 = vmul.f32 %v3773_v21, %v3855_v56  ;;  %v860_v26 = vmul.f32 %v799_v11, %v3855_v56 }
  0xef   : > { %5038 = vst [vmem:[#allocation9_spill] sm:$0xff] %v3803_v42  ;;  %3004 = vmatprep.subr.msk.mxu0 %vm455_vm0, %v3803_v42  ;;  %3156 = vmatprep.subr.msk.mxu1 %vm455_vm0, %v3803_v42  ;;  %v3820_v46 = vadd.f32 %v3768_v19, %v576_v45  ;;  %v858_v19 = vmul.f32 %v799_v11, %v3845_v53 }
  0xf0   : > { %v855_v13 = vmul.f32 %v795_v47, %v3939_v9  ;;  %v823_v29 = vmul.f32 %v3773_v21, %v3939_v9  ;;  %v825_v36 = vmul.f32 %v783_v27, %v3834_v50  ;;  %v865_v40 = vmul.f32 %v803_v35, %v3834_v50 }
  0xf1   : > { %v854_v51 = vmul.f32 %v795_v47, %v3820_v46  ;;  %v3849_v54 = vmul.f32 %v3755_v10, %v3820_v46  ;;  %v3864_v58 = vmul.f32 %v3776_v23, %v3820_v46  ;;  %v3874_v60 = vmul.f32 %v3825_v48, %v3820_v46 }
  0xf2   : > { %3005 = vmatpush3.xpose.msk.msra.mxu0 %vm455_vm0, %v3803_v42  ;;  %3164 = vmatpush3.xpose.msk.msra.mxu1 %vm455_vm0, %v3803_v42  ;;  %v822_v24 = vmul.f32 %v3773_v21, %v3820_v46  ;;  %v862_v34 = vmul.f32 %v799_v11, %v3820_v46  ;;  %v863_v21 = vmul.f32 %v799_v11, %v3939_v9 }
  0xf3   : > { %3006 = vmatprep.subr.msk.mxu0 %vm455_vm0, %v3827_v49  ;;  %3157 = vmatprep.subr.msk.mxu1 %vm455_vm0, %v3827_v49  ;;  %v828_v41 = vmul.f32 %v783_v27, %v3855_v56  ;;  %v866_v43 = vmul.f32 %v803_v35, %v3845_v53  ;;  %v867_v44 = vmul.f32 %v803_v35, %v3842_v52 }
  0xf4   : > { %3075 = vmatprep.mubr.msk.f32.mxu1 %vm455_vm0, %v854_v51  ;;  %v830_v45 = vmul.f32 %v783_v27, %v3820_v46  ;;  %v868_v47 = vmul.f32 %v803_v35, %v3855_v56  ;;  %v831_v51 = vmul.f32 %v783_v27, %v3939_v9  ;;  %v869_v11 = vmul.f32 %v803_v35, %v3852_v55 }
  0xf6   : > { %3007 = vmatpush3.xpose.msk.msra.mxu0 %vm455_vm0, %v3827_v49  ;;  %3165 = vmatpush3.xpose.msk.msra.mxu1 %vm455_vm0, %v3827_v49 }
  0xf7   : > { %3008 = vmatprep.subr.msk.mxu0 %vm455_vm0, %v3866_v59  ;;  %3158 = vmatprep.subr.msk.mxu1 %vm455_vm0, %v3866_v59 }
  0xfa   : > { %3009 = vmatpush3.xpose.msk.msra.mxu0 %vm455_vm0, %v3866_v59  ;;  %3166 = vmatpush3.xpose.msk.msra.mxu1 %vm455_vm0, %v3866_v59 }
  0xfb   : > { %3010 = vmatprep.subr.msk.mxu0 %vm455_vm0, %v3899_v4  ;;  %3159 = vmatprep.subr.msk.mxu1 %vm455_vm0, %v3899_v4 }
  0xfe   : > { %3011 = vmatpush3.xpose.msk.msra.mxu0 %vm455_vm0, %v3899_v4  ;;  %3167 = vmatpush3.xpose.msk.msra.mxu1 %vm455_vm0, %v3899_v4 }
  0xff   : > { %3012 = vmatprep.subr.msk.mxu0 %vm455_vm0, %v3910_v5  ;;  %3160 = vmatprep.subr.msk.mxu1 %vm455_vm0, %v3910_v5 }
 0x102   : > { %3013 = vmatpush3.xpose.msk.msra.mxu0 %vm455_vm0, %v3910_v5  ;;  %3168 = vmatpush3.xpose.msk.msra.mxu1 %vm455_vm0, %v3910_v5 }
 0x103   : > { %3014 = vmatprep.subr.msk.mxu0 %vm455_vm0, %v3921_v6  ;;  %3161 = vmatprep.subr.msk.mxu1 %vm455_vm0, %v3921_v6 }
 0x106   : > { %3015 = vmatpush3.xpose.msk.msra.mxu0 %vm455_vm0, %v3921_v6  ;;  %3169 = vmatpush3.xpose.msk.msra.mxu1 %vm455_vm0, %v3921_v6 }
 0x107   : > { %3016 = vmatprep.subr.msk.mxu0 %vm455_vm0, %v3932_v7  ;;  %3162 = vmatprep.subr.msk.mxu1 %vm455_vm0, %v3932_v7 }
 0x10a   : > { %3017 = vmatpush3.xpose.msk.msra.mxu0 %vm455_vm0, %v3932_v7  ;;  %3170 = vmatpush3.xpose.msk.msra.mxu1 %vm455_vm0, %v3932_v7 }
 0x10d   : > { %3019 = vmatmul.mubr.msk.f32.vlgmr.msra.gmra.mxu0 %vm455_vm0, %v817_v12  ;;  %3076 = vmatmul.mubr.msk.f32.vlgmr.msra.gmra.mxu1 %vm455_vm0, %v855_v13  ;;  %v870_v12 = vmul.f32 %v803_v35, %v3820_v46  ;;  %v833_v13 = vmul.f32 %v3755_v10, %v3834_v50  ;;  %v873_v46 = vmul.f32 %v3776_v23, %v3834_v50 }
 0x10e   : > { %3021 = vmatprep.mubr.msk.f32.mxu0 %vm455_vm0, %v818_v15  ;;  %3078 = vmatprep.mubr.msk.f32.mxu1 %vm455_vm0, %v856_v16  ;;  %v871_v15 = vmul.f32 %v803_v35, %v3939_v9  ;;  %v834_v16 = vmul.f32 %v3755_v10, %v3845_v53 }
 0x111   : > { %3022 = vmatmul.mubr.msk.f32.gmra.mxu0 %vm455_vm0, %v819_v14  ;;  %3079 = vmatmul.mubr.msk.f32.gmra.mxu1 %vm455_vm0, %v857_v17  ;;  %v836_v14 = vmul.f32 %v3755_v10, %v3855_v56  ;;  %v874_v17 = vmul.f32 %v3776_v23, %v3845_v53 }
 0x112   : > { %3024 = vmatprep.mubr.msk.f32.mxu0 %vm455_vm0, %v820_v18  ;;  %3081 = vmatprep.mubr.msk.f32.mxu1 %vm455_vm0, %v858_v19  ;;  %v875_v18 = vmul.f32 %v3776_v23, %v3842_v52  ;;  %v876_v19 = vmul.f32 %v3776_v23, %v3855_v56 }
 0x115   : > { %3025 = vmatmul.mubr.msk.f32.gmra.mxu0 %vm455_vm0, %v821_v20  ;;  %3082 = vmatmul.mubr.msk.f32.gmra.mxu1 %vm455_vm0, %v859_v22  ;;  %v839_v20 = vmul.f32 %v3755_v10, %v3939_v9  ;;  %v877_v22 = vmul.f32 %v3776_v23, %v3852_v55 }
 0x116   : > { %3027 = vmatprep.mubr.msk.f32.mxu0 %vm455_vm0, %v822_v24  ;;  %3084 = vmatprep.mubr.msk.f32.mxu1 %vm455_vm0, %v860_v26  ;;  %v879_v24 = vmul.f32 %v3776_v23, %v3939_v9  ;;  %v845_v23 = vmul.f32 %v3825_v48, %v3852_v55 }
 0x119   : > { %3028 = vmatmul.mubr.msk.f32.gmra.mxu0 %vm455_vm0, %v823_v29  ;;  %3085 = vmatmul.mubr.msk.f32.gmra.mxu1 %vm455_vm0, %v861_v30 }
 0x11a   : > { %3030 = vmatprep.mubr.msk.f32.mxu0 %vm455_vm0, %v824_v33  ;;  %3087 = vmatprep.mubr.msk.f32.mxu1 %vm455_vm0, %v862_v34 }
 0x11d   : > { %3031 = vmatmul.mubr.msk.f32.gmra.mxu0 %vm455_vm0, %v825_v36  ;;  %3088 = vmatmul.mubr.msk.f32.gmra.mxu1 %vm455_vm0, %v863_v21 }
 0x11e   : > { %3033 = vmatprep.mubr.msk.f32.mxu0 %vm455_vm0, %v826_v37  ;;  %3090 = vmatprep.mubr.msk.f32.mxu1 %vm455_vm0, %v864_v39 }
 0x121   : > { %3034 = vmatmul.mubr.msk.f32.gmra.mxu0 %vm455_vm0, %v827_v8  ;;  %3091 = vmatmul.mubr.msk.f32.gmra.mxu1 %vm455_vm0, %v865_v40 }
 0x122   : > { %3036 = vmatprep.mubr.msk.f32.mxu0 %vm455_vm0, %v828_v41  ;;  %3093 = vmatprep.mubr.msk.f32.mxu1 %vm455_vm0, %v866_v43 }
 0x125   : > { %3037 = vmatmul.mubr.msk.f32.gmra.mxu0 %vm455_vm0, %v829_v25  ;;  %3094 = vmatmul.mubr.msk.f32.gmra.mxu1 %vm455_vm0, %v867_v44 }
 0x126   : > { %3039 = vmatprep.mubr.msk.f32.mxu0 %vm455_vm0, %v830_v45  ;;  %3096 = vmatprep.mubr.msk.f32.mxu1 %vm455_vm0, %v868_v47 }
 0x129   : > { %3040 = vmatmul.mubr.msk.f32.gmra.mxu0 %vm455_vm0, %v831_v51  ;;  %3097 = vmatmul.mubr.msk.f32.gmra.mxu1 %vm455_vm0, %v869_v11 }
 0x12a   : > { %3042 = vmatprep.mubr.msk.f32.mxu0 %vm455_vm0, %v3787_v31  ;;  %3099 = vmatprep.mubr.msk.f32.mxu1 %vm455_vm0, %v870_v12  ;;  %v835_v31 = vmul.f32 %v3755_v10, %v3842_v52 }
 0x12d   : > { %3043 = vmatmul.mubr.msk.f32.gmra.mxu0 %vm455_vm0, %v833_v13  ;;  %3100 = vmatmul.mubr.msk.f32.gmra.mxu1 %vm455_vm0, %v871_v15 }
 0x12e   : > { %3045 = vmatprep.mubr.msk.f32.mxu0 %vm455_vm0, %v834_v16  ;;  %3102 = vmatprep.mubr.msk.f32.mxu1 %vm455_vm0, %v3791_v32  ;;  %v837_v32 = vmul.f32 %v3755_v10, %v3852_v55  ;;  %v842_v10 = vmul.f32 %v3825_v48, %v3845_v53 }
 0x131   : > { %3046 = vmatmul.mubr.msk.f32.gmra.mxu0 %vm455_vm0, %v835_v31  ;;  %3103 = vmatmul.mubr.msk.f32.gmra.mxu1 %vm455_vm0, %v873_v46 }
 0x132   : > { %3048 = vmatprep.mubr.msk.f32.mxu0 %vm455_vm0, %v836_v14  ;;  %3105 = vmatprep.mubr.msk.f32.mxu1 %vm455_vm0, %v874_v17 }
 0x135   : > { %3049 = vmatmul.mubr.msk.f32.gmra.mxu0 %vm455_vm0, %v837_v32  ;;  %3106 = vmatmul.mubr.msk.f32.gmra.mxu1 %vm455_vm0, %v875_v18 }
 0x136   : > { %3051 = vmatprep.mubr.msk.f32.mxu0 %vm455_vm0, %v3849_v54  ;;  %3108 = vmatprep.mubr.msk.f32.mxu1 %vm455_vm0, %v876_v19  ;;  %v841_v54 = vmul.f32 %v3825_v48, %v3834_v50  ;;  %v847_v50 = vmul.f32 %v3825_v48, %v3939_v9 }
 0x139   : > { %3052 = vmatmul.mubr.msk.f32.gmra.mxu0 %vm455_vm0, %v839_v20  ;;  %3109 = vmatmul.mubr.msk.f32.gmra.mxu1 %vm455_vm0, %v877_v22 }
 0x13a   : > { %3054 = vmatprep.mubr.msk.f32.mxu0 %vm455_vm0, %v3860_v57  ;;  %3111 = vmatprep.mubr.msk.f32.mxu1 %vm455_vm0, %v3864_v58  ;;  %v843_v57 = vmul.f32 %v3825_v48, %v3842_v52  ;;  %v844_v58 = vmul.f32 %v3825_v48, %v3855_v56 }
 0x13d   : > { %3055 = vmatmul.mubr.msk.f32.gmra.mxu0 %vm455_vm0, %v841_v54  ;;  %3112 = vmatmul.mubr.msk.f32.gmra.mxu1 %vm455_vm0, %v879_v24 }
 0x13e   : > { %3057 = vmatprep.mubr.msk.f32.mxu0 %vm455_vm0, %v842_v10 }
 0x141   : > { %3058 = vmatmul.mubr.msk.f32.gmra.mxu0 %vm455_vm0, %v843_v57 }
 0x142   : > { %3060 = vmatprep.mubr.msk.f32.mxu0 %vm455_vm0, %v844_v58 }
 0x145   : > { %3061 = vmatmul.mubr.msk.f32.gmra.mxu0 %vm455_vm0, %v845_v23 }
 0x146   : > { %3063 = vmatprep.mubr.msk.f32.mxu0 %vm455_vm0, %v3874_v60 }
 0x149   : > { %3064 = vmatmul.mubr.msk.f32.gmra.mxu0 %vm455_vm0, %v847_v50 }
 0x14a   : > { %3066 = vmatprep.mubr.msk.f32.mxu0 %vm455_vm0, %v3881_v61 }
 0x14d   : > { %3067 = vmatmul.mubr.msk.f32.gmra.mxu0 %vm455_vm0, %v3884_v63 }
 0x14e   : > { %3069 = vmatprep.mubr.msk.f32.mxu0 %vm455_vm0, %v3887_v0 }
 0x151   : > { %3070 = vmatmul.mubr.msk.f32.gmra.mxu0 %vm455_vm0, %v3890_v1 }
 0x152   : > { %3072 = vmatprep.mubr.msk.f32.mxu0 %vm455_vm0, %v3893_v2 }
 0x155   : > { %3073 = vmatmul.mubr.msk.f32.gmra.mxu0 %vm455_vm0, %v3896_v3 }
 0x1cd   : > { %v4105_v48 = vpop.f32.mrf.mxu0  ;;  %v4107_v52 = vpop.f32.mrf.mxu1 }
 0x1ce   : > { %5045 = vst [vmem:[#allocation16_spill] sm:$0xff] %v4107_v52  ;;  %v1485_v53 = vsel %vm1481_vm1, %v4105_v48, -inf  ;;  %v1599_v0 = vsel %vm1481_vm1, %v4107_v52, -inf }
 0x1cf   : > { %v4111_v55 = vpop.f32.mrf.mxu1  ;;  %1486 = vmax.xlane.f32.xlu0 %v1485_v53  ;;  %v4113_v56 = vpop.f32.mrf.mxu0 }
 0x1d0   : > { %v1596_v60 = vsel %vm1481_vm1, %v4111_v55, -inf  ;;  %v1482_v27 = vsel %vm1481_vm1, %v4113_v56, -inf }
 0x1d1   : > { %1597 = vmax.xlane.f32.xlu1 %v1596_v60  ;;  %v4117_v61 = vpop.f32.mrf.mxu0  ;;  %v4119_v63 = vpop.f32.mrf.mxu1 }
 0x1d2   : > { %v1491_v3 = vsel %vm1481_vm1, %v4117_v61, -inf  ;;  %v1605_v30 = vsel %vm1481_vm1, %v4119_v63, -inf }
 0x1d3   : > { %v4123_v1 = vpop.f32.mrf.mxu1  ;;  %1600 = vmax.xlane.f32.xlu0 %v1599_v0  ;;  %v4125_v2 = vpop.f32.mrf.mxu0 }
 0x1d4   : > { %v1488_v35 = vsel %vm1481_vm1, %v4125_v2, -inf  ;;  %v1602_v40 = vsel %vm1481_vm1, %v4123_v1, -inf }
 0x1d5   : > { %v4129_v9 = vpop.f32.mrf.mxu1  ;;  %1492 = vmax.xlane.f32.xlu1 %v1491_v3  ;;  %v4131_v26 = vpop.f32.mrf.mxu0 }
 0x1d6   : > { %v1497_v37 = vsel %vm1481_vm1, %v4131_v26, -inf  ;;  %v1611_v47 = vsel %vm1481_vm1, %v4129_v9, -inf }
 0x1d7   : > { %v4135_v28 = vpop.f32.mrf.mxu1  ;;  %1483 = vmax.xlane.f32.xlu0 %v1482_v27  ;;  %v4137_v29 = vpop.f32.mrf.mxu0 }
 0x1d8   : > { %v1608_v25 = vsel %vm1481_vm1, %v4135_v28, -inf  ;;  %v1494_v15 = vsel %vm1481_vm1, %v4137_v29, -inf }
 0x1d9   : > { %v4141_v33 = vpop.f32.mrf.mxu1  ;;  %1606 = vmax.xlane.f32.xlu1 %v1605_v30  ;;  %v4143_v34 = vpop.f32.mrf.mxu0 }
 0x1da   : > { %v1503_v11 = vsel %vm1481_vm1, %v4143_v34, -inf  ;;  %v1617_v14 = vsel %vm1481_vm1, %v4141_v33, -inf }
 0x1db   : > { %v4147_v36 = vpop.f32.mrf.mxu1  ;;  %1489 = vmax.xlane.f32.xlu0 %v1488_v35  ;;  %v4149_v21 = vpop.f32.mrf.mxu0 }
 0x1dc   : > { %v1500_v16 = vsel %vm1481_vm1, %v4149_v21, -inf  ;;  %v1614_v19 = vsel %vm1481_vm1, %v4147_v36, -inf }
 0x1dd   : > { %v4153_v39 = vpop.f32.mrf.mxu1  ;;  %1498 = vmax.xlane.f32.xlu1 %v1497_v37  ;;  %v4155_v8 = vpop.f32.mrf.mxu0 }
 0x1de   : > { %5046 = vst [vmem:[#allocation17_spill] sm:$0xff] %v4153_v39  ;;  %v1509_v17 = vsel %vm1481_vm1, %v4155_v8, -inf  ;;  %v1623_v24 = vsel %vm1481_vm1, %v4153_v39, -inf }
 0x1df   : > { %v4159_v41 = vpop.f32.mrf.mxu1  ;;  %1603 = vmax.xlane.f32.xlu0 %v1602_v40  ;;  %v4161_v43 = vpop.f32.mrf.mxu0 }
 0x1e0   : > { %5047 = vst [vmem:[#allocation18_spill] sm:$0xff] %v4159_v41  ;;  %v1506_v20 = vsel %vm1481_vm1, %v4161_v43, -inf  ;;  %v1620_v23 = vsel %vm1481_vm1, %v4159_v41, -inf }
 0x1e1   : > { %v4165_v44 = vpop.f32.mrf.mxu1  ;;  %1609 = vmax.xlane.f32.xlu1 %v1608_v25  ;;  %v4167_v45 = vpop.f32.mrf.mxu0 }
 0x1e2   : > { %v1629_v10 = vsel %vm1481_vm1, %v4165_v44, -inf  ;;  %v1515_v0 = vsel %vm1481_vm1, %v4167_v45, -inf }
 0x1e3   : > { %1612 = vmax.xlane.f32.xlu0 %v1611_v47  ;;  %v4171_v51 = vpop.f32.mrf.mxu0  ;;  %v4175_v12 = vpop.f32.mrf.mxu1 }
 0x1e4   : > { %v1512_v50 = vsel %vm1481_vm1, %v4171_v51, -inf  ;;  %v1626_v35 = vsel %vm1481_vm1, %v4175_v12, -inf }
 0x1e5   : > { %1504 = vmax.xlane.f32.xlu1 %v1503_v11  ;;  %v4177_v13 = vpop.f32.mrf.mxu0  ;;  %v4183_v31 = vpop.f32.mrf.mxu1 }
 0x1e6   : > { %v1521_v47 = vsel %vm1481_vm1, %v4177_v13, -inf }
 0x1e7   : > { %1495 = vmax.xlane.f32.xlu0 %v1494_v15  ;;  %v4185_v46 = vpop.f32.mrf.mxu0  ;;  %v4191_v32 = vpop.f32.mrf.mxu1 }
 0x1e8   : > { %v1518_v3 = vsel %vm1481_vm1, %v4185_v46, -inf }
 0x1e9   : > { %1501 = vmax.xlane.f32.xlu1 %v1500_v16  ;;  %v4193_v18 = vpop.f32.mrf.mxu0  ;;  %v4199_v22 = vpop.f32.mrf.mxu1 }
 0x1eb   : > { %1618 = vmax.xlane.f32.xlu0 %v1617_v14  ;;  %v4201_v54 = vpop.f32.mrf.mxu0  ;;  %v4207_v57 = vpop.f32.mrf.mxu1  ;;  %v1635_v14 = vsel %vm1481_vm1, %v4183_v31, -inf }
 0x1ed   : > { %1510 = vmax.xlane.f32.xlu1 %v1509_v17  ;;  %v4209_v58 = vpop.f32.mrf.mxu0  ;;  %v4215_v53 = vpop.f32.mrf.mxu1 }
 0x1ee   : > { %5048 = vst [vmem:[#allocation19_spill] sm:$0xff] %v4215_v53  ;;  %v1533_v37 = vsel %vm1481_vm1, %v4209_v58, -inf }
 0x1ef   : > { %1615 = vmax.xlane.f32.xlu0 %v1614_v19  ;;  %v4217_v60 = vpop.f32.mrf.mxu0  ;;  %v4223_v27 = vpop.f32.mrf.mxu1 }
 0x1f0   : > { %v1644_v11 = vsel %vm1481_vm1, %v4223_v27, -inf }
 0x1f1   : > { %1507 = vmax.xlane.f32.xlu1 %v1506_v20  ;;  %v4225_v30 = vpop.f32.mrf.mxu0  ;;  %v4231_v40 = vpop.f32.mrf.mxu1 }
 0x1f2   : > { %v1653_v17 = vsel %vm1481_vm1, %v4231_v40, -inf }
 0x1f3   : > { %1624 = vmax.xlane.f32.xlu0 %v1623_v24  ;;  %v4233_v25 = vpop.f32.mrf.mxu0  ;;  %v4239_v15 = vpop.f32.mrf.mxu1  ;;  %v1632_v24 = vsel %vm1481_vm1, %v4191_v32, -inf }
 0x1f5   : > { %1630 = vmax.xlane.f32.xlu1 %v1629_v10  ;;  %v4241_v16 = vpop.f32.mrf.mxu0  ;;  %v4247_v19 = vpop.f32.mrf.mxu1 }
 0x1f6   : > { %v1659_v10 = vsel %vm1481_vm1, %v4247_v19, -inf }
 0x1f7   : > { %1621 = vmax.xlane.f32.xlu0 %v1620_v23  ;;  %v4249_v20 = vpop.f32.mrf.mxu0  ;;  %v4255_v23 = vpop.f32.mrf.mxu1 }
 0x1f9   : > { %1513 = vmax.xlane.f32.xlu1 %v1512_v50  ;;  %v4257_v50 = vpop.f32.mrf.mxu0 }
 0x1fb   : > { %1516 = vmax.xlane.f32.xlu0 %v1515_v0  ;;  %v1527_v0 = vsel %vm1481_vm1, %v4193_v18, -inf }
 0x1fd   : > { %1519 = vmax.xlane.f32.xlu1 %v1518_v3  ;;  %v1656_v3 = vsel %vm1481_vm1, %v4255_v23, -inf }
 0x1ff   : > { %1627 = vmax.xlane.f32.xlu0 %v1626_v35  ;;  %v4263_v35 = vpop.f32.mrf.mxu1 }
 0x201   : > { %1534 = vmax.xlane.f32.xlu1 %v1533_v37  ;;  %v4265_v37 = vpop.f32.mrf.mxu0 }
 0x202   : > { %5049 = vst [vmem:[#allocation20_spill] sm:$0xff] %v4265_v37 }
 0x203   : > { %1522 = vmax.xlane.f32.xlu0 %v1521_v47  ;;  %v1641_v47 = vsel %vm1481_vm1, %v4199_v22, -inf }
 0x205   : > { %1645 = vmax.xlane.f32.xlu1 %v1644_v11  ;;  %v1665_v11 = vsel %vm1481_vm1, %v4263_v35, -inf }
 0x207   : > { %1636 = vmax.xlane.f32.xlu0 %v1635_v14  ;;  %v4271_v14 = vpop.f32.mrf.mxu1 }
 0x209   : > { %1654 = vmax.xlane.f32.xlu1 %v1653_v17  ;;  %v4273_v17 = vpop.f32.mrf.mxu0  ;;  %v4285_v62 = vpop.f32.mrf.mxu1 }
 0x20a   : > { %5051 = vst [vmem:[#allocation22_spill] sm:$0xff] %v4285_v62  ;;  %v1671_v7 = vsel %vm1481_vm1, %v4285_v62, -inf }
 0x20b   : > { %1633 = vmax.xlane.f32.xlu0 %v1632_v24  ;;  %v1524_v24 = vsel %vm1481_vm1, %v4201_v54, -inf }
 0x20d   : > { %1660 = vmax.xlane.f32.xlu1 %v1659_v10  ;;  %v1662_v10 = vsel %vm1481_vm1, %v4271_v14, -inf }
 0x20f   : > { %1528 = vmax.xlane.f32.xlu0 %v1527_v0  ;;  %v4279_v0 = vpop.f32.mrf.mxu0 }
 0x210   : > { %5050 = vst [vmem:[#allocation21_spill] sm:$0xff] %v4279_v0 }
 0x211   : > { %1657 = vmax.xlane.f32.xlu1 %v1656_v3  ;;  %v1638_v3 = vsel %vm1481_vm1, %v4207_v57, -inf }
 0x213   : > { %1642 = vmax.xlane.f32.xlu0 %v1641_v47  ;;  %v1557_v47 = vsel %vm1481_vm1, %v4273_v17, -inf }
 0x215   : > { %1666 = vmax.xlane.f32.xlu1 %v1665_v11  ;;  %v4287_v11 = vpop.f32.mrf.mxu0 }
 0x216   : > { %5052 = vst [vmem:[#allocation23_spill] sm:$0xff] %v4287_v11 }
 0x217   : > { %1525 = vmax.xlane.f32.xlu0 %v1524_v24  ;;  %v1647_v24 = vsel %vm1481_vm1, %v4215_v53, -inf  ;;  %v4295_v5 = vpop.f32.mrf.mxu0 }
 0x218   : > { %v1560_v59 = vsel %vm1481_vm1, %v4295_v5, -inf }
 0x219   : > { %1663 = vmax.xlane.f32.xlu1 %v1662_v10  ;;  %v4293_v10 = vpop.f32.mrf.mxu1 }
 0x21a   : > { %v1668_v6 = vsel %vm1481_vm1, %v4293_v10, -inf }
 0x21b   : > { %1639 = vmax.xlane.f32.xlu0 %v1638_v3  ;;  %v1530_v3 = vsel %vm1481_vm1, %v4217_v60, -inf }
 0x21d   : > { %1558 = vmax.xlane.f32.xlu1 %v1557_v47  ;;  %v4301_v47 = vpop.f32.mrf.mxu0 }
 0x21f   : > { %1648 = vmax.xlane.f32.xlu0 %v1647_v24  ;;  %v1539_v24 = vsel %vm1481_vm1, %v4225_v30, -inf  ;;  %v4307_v4 = vpop.f32.mrf.mxu0 }
 0x221   : > { %1672 = vmax.xlane.f32.xlu1 %v1671_v7  ;;  %v1536_v7 = vsel %vm1481_vm1, %v4233_v25, -inf  ;;  %v4313_v49 = vpop.f32.mrf.mxu0 }
 0x223   : > { %1531 = vmax.xlane.f32.xlu0 %v1530_v3  ;;  %v1569_v3 = vsel %vm1481_vm1, %v4301_v47, -inf  ;;  %v4319_v38 = vpop.f32.mrf.mxu0 }
 0x225   : > { %1669 = vmax.xlane.f32.xlu1 %v1668_v6  ;;  %v1650_v6 = vsel %vm1481_vm1, %v4239_v15, -inf  ;;  %v4325_v42 = vpop.f32.mrf.mxu0 }
 0x226   : > { %5053 = vst [vmem:[#allocation24_spill] sm:$0xff] %v4325_v42 }
 0x227   : > { %1540 = vmax.xlane.f32.xlu0 %v1539_v24  ;;  %v1566_v24 = vsel %vm1481_vm1, %v4307_v4, -inf  ;;  %v4331_v53 = vpop.f32.mrf.mxu0 }
 0x228   : > { %5054 = vst [vmem:[#allocation25_spill] sm:$0xff] %v4331_v53 }
 0x229   : > { %1561 = vmax.xlane.f32.xlu1 %v1560_v59  ;;  %v1545_v59 = vsel %vm1481_vm1, %v4241_v16, -inf  ;;  %v4337_v39 = vpop.f32.mrf.mxu0 }
 0x22a   : > { %5055 = vst [vmem:[#allocation26_spill] sm:$0xff] %v4337_v39 }
 0x22b   : > { %1537 = vmax.xlane.f32.xlu0 %v1536_v7  ;;  %v1575_v7 = vsel %vm1481_vm1, %v4313_v49, -inf  ;;  %v4343_v52 = vpop.f32.mrf.mxu0 }
 0x22c   : > { %5056 = vst [vmem:[#allocation27_spill] sm:$0xff] %v4343_v52 }
 0x22d   : > { %1570 = vmax.xlane.f32.xlu1 %v1569_v3  ;;  %v1542_v3 = vsel %vm1481_vm1, %v4249_v20, -inf  ;;  %v4349_v41 = vpop.f32.mrf.mxu0 }
 0x22e   : > { %5057 = vst [vmem:[#allocation28_spill] sm:$0xff] %v4349_v41 }
 0x22f   : > { %1651 = vmax.xlane.f32.xlu0 %v1650_v6  ;;  %v1572_v6 = vsel %vm1481_vm1, %v4319_v38, -inf }
 0x231   : > { %1567 = vmax.xlane.f32.xlu1 %v1566_v24  ;;  %v1551_v24 = vsel %vm1481_vm1, %v4257_v50, -inf }
 0x233   : > { %1546 = vmax.xlane.f32.xlu0 %v1545_v59  ;;  %v1578_v59 = vsel %vm1481_vm1, %v4331_v53, -inf }
 0x235   : > { %1576 = vmax.xlane.f32.xlu1 %v1575_v7  ;;  %v1548_v7 = vsel %vm1481_vm1, %v4265_v37, -inf }
 0x237   : > { %1543 = vmax.xlane.f32.xlu0 %v1542_v3  ;;  %v1587_v3 = vsel %vm1481_vm1, %v4337_v39, -inf  ;;  %v4355_v39 = vpop.f32.mrf.mxu0 }
 0x238   : > { %5058 = vst [vmem:[#allocation29_spill] sm:$0xff] %v4355_v39 }
 0x239   : > { %1573 = vmax.xlane.f32.xlu1 %v1572_v6  ;;  %v1554_v6 = vsel %vm1481_vm1, %v4279_v0, -inf }
 0x23b   : > { %1552 = vmax.xlane.f32.xlu0 %v1551_v24  ;;  %v1584_v24 = vsel %vm1481_vm1, %v4343_v52, -inf }
 0x23d   : > { %1579 = vmax.xlane.f32.xlu1 %v1578_v59  ;;  %v1563_v59 = vsel %vm1481_vm1, %v4287_v11, -inf }
 0x23f   : > { %1549 = vmax.xlane.f32.xlu0 %v1548_v7  ;;  %v1593_v7 = vsel %vm1481_vm1, %v4349_v41, -inf }
 0x241   : > { %1588 = vmax.xlane.f32.xlu1 %v1587_v3  ;;  %v1581_v3 = vsel %vm1481_vm1, %v4325_v42, -inf }
 0x243   : > { %1555 = vmax.xlane.f32.xlu0 %v1554_v6  ;;  %v1590_v6 = vsel %vm1481_vm1, %v4355_v39, -inf }
 0x245   : > { %1585 = vmax.xlane.f32.xlu1 %v1584_v24 }
 0x247   : > { %1564 = vmax.xlane.f32.xlu0 %v1563_v59 }
 0x249   : > { %1594 = vmax.xlane.f32.xlu1 %v1593_v7 }
 0x24b   : > { %1582 = vmax.xlane.f32.xlu0 %v1581_v3 }
 0x24d   : > { %1591 = vmax.xlane.f32.xlu1 %v1590_v6 }
 0x258   : > { %v1487_v52 = vpop.xlane.xlu0 %1486 }
 0x259   : > { %v1675_v24 = vsub.f32 %v4105_v48, %v1487_v52 }
 0x25a   : > { %v1598_v53 = vpop.xlane.xlu1 %1597 }
 0x25b   : > { %v1740_v11 = vmul.f32 1.442695, %v1675_v24  ;;  %v1712_v59 = vsub.f32 %v4111_v55, %v1598_v53 }
 0x25c   : > { %v4363_v0 = vpop.xlane.xlu0 %1600 }
 0x25d   : > { %3215 = vpow2.f32 %v1740_v11  ;;  %v1814_v41 = vmul.f32 1.442695, %v1712_v59 }
 0x25e   : > { %v1493_v7 = vpop.xlane.xlu1 %1492 }
 0x25f   : > { %3217 = vpow2.f32 %v1814_v41  ;;  %v1677_v42 = vsub.f32 %v4117_v61, %v1493_v7 }
 0x260   : > { %v1484_v3 = vpop.xlane.xlu0 %1483 }
 0x261   : > { %v1744_v62 = vmul.f32 1.442695, %v1677_v42  ;;  %v1674_v39 = vsub.f32 %v4113_v56, %v1484_v3 }
 0x262   : > { %v1607_v6 = vpop.xlane.xlu1 %1606 }
 0x263   : > { %3219 = vpow2.f32 %v1744_v62  ;;  %v1738_v37 = vmul.f32 1.442695, %v1674_v39  ;;  %v1715_v48 = vsub.f32 %v4119_v63, %v1607_v6 }
 0x264   : > { %v1490_v52 = vpop.xlane.xlu0 %1489 }
 0x265   : > { %3221 = vpow2.f32 %v1738_v37  ;;  %v1820_v55 = vmul.f32 1.442695, %v1715_v48  ;;  %v1676_v53 = vsub.f32 %v4125_v2, %v1490_v52 }
 0x266   : > { %v1499_v11 = vpop.xlane.xlu1 %1498 }
 0x267   : > { %3223 = vpow2.f32 %v1820_v55  ;;  %v1742_v24 = vmul.f32 1.442695, %v1676_v53  ;;  %v1679_v41 = vsub.f32 %v4131_v26, %v1499_v11 }
 0x268   : > { %v1604_v61 = vpop.xlane.xlu0 %1603 }
 0x269   : > { %3225 = vpow2.f32 %v1742_v24  ;;  %v1748_v42 = vmul.f32 1.442695, %v1679_v41  ;;  %v1714_v56 = vsub.f32 %v4123_v1, %v1604_v61 }
 0x26a   : > { %v4371_v59 = vpop.eup %3215  ;;  %v1610_v62 = vpop.xlane.xlu1 %1609 }
 0x26b   : > { %3227 = vpow2.f32 %v1748_v42  ;;  %v1818_v63 = vmul.f32 1.442695, %v1714_v56  ;;  %v1716_v39 = vsub.f32 %v4135_v28, %v1610_v62  ;;  %v1869_v2 = vsel %vm1481_vm1, %v4371_v59, 0.0 }
 0x26c   : > { %v4376_v37 = vpop.eup %3217  ;;  %v1613_v7 = vpop.xlane.xlu0 %1612  ;;  %1870 = vadd.xlane.f32.xlu1 %v1869_v2 }
 0x26d   : > { %5059 = vst [vmem:[#allocation30_spill] sm:$0xff] %v4376_v37  ;;  %3229 = vpow2.f32 %v1818_v63  ;;  %v1822_v26 = vmul.f32 1.442695, %v1716_v39  ;;  %v1717_v3 = vsub.f32 %v4129_v9, %v1613_v7  ;;  %v1980_v52 = vsel %vm1481_vm1, %v4376_v37, 0.0 }
 0x26e   : > { %v1505_v6 = vpop.xlane.xlu1 %1504 }
 0x26f   : > { %3231 = vpow2.f32 %v1822_v26  ;;  %v1824_v1 = vmul.f32 1.442695, %v1717_v3  ;;  %v1681_v48 = vsub.f32 %v4143_v34, %v1505_v6 }
 0x270   : > { %v4382_v28 = vpop.eup %3219  ;;  %v1496_v55 = vpop.xlane.xlu0 %1495  ;;  %1981 = vadd.xlane.f32.xlu1 %v1980_v52 }
 0x271   : > { %3233 = vpow2.f32 %v1824_v1  ;;  %v1752_v53 = vmul.f32 1.442695, %v1681_v48  ;;  %v1678_v11 = vsub.f32 %v4137_v29, %v1496_v55  ;;  %v1875_v9 = vsel %vm1481_vm1, %v4382_v28, 0.0 }
 0x272   : > { %v4385_v24 = vpop.eup %3221  ;;  %v1502_v41 = vpop.xlane.xlu1 %1501 }
 0x273   : > { %3235 = vpow2.f32 %v1752_v53  ;;  %v1746_v61 = vmul.f32 1.442695, %v1678_v11  ;;  %v1680_v34 = vsub.f32 %v4149_v21, %v1502_v41  ;;  %v1866_v42 = vsel %vm1481_vm1, %v4385_v24, 0.0 }
 0x274   : > { %v4392_v56 = vpop.eup %3223  ;;  %v1619_v62 = vpop.xlane.xlu0 %1618  ;;  %1867 = vadd.xlane.f32.xlu0 %v1866_v42  ;;  %1876 = vadd.xlane.f32.xlu1 %v1875_v9 }
 0x275   : > { %3237 = vpow2.f32 %v1746_v61  ;;  %v1750_v29 = vmul.f32 1.442695, %v1680_v34  ;;  %v1719_v63 = vsub.f32 %v4141_v33, %v1619_v62  ;;  %v1989_v7 = vsel %vm1481_vm1, %v4392_v56, 0.0 }
 0x276   : > { %v4395_v39 = vpop.eup %3225  ;;  %v1511_v2 = vpop.xlane.xlu1 %1510 }
 0x277   : > { %3239 = vpow2.f32 %v1750_v29  ;;  %v1828_v21 = vmul.f32 1.442695, %v1719_v63  ;;  %v1683_v26 = vsub.f32 %v4155_v8, %v1511_v2  ;;  %v1872_v3 = vsel %vm1481_vm1, %v4395_v39, 0.0 }
 0x278   : > { %v4402_v6 = vpop.eup %3227  ;;  %v1616_v1 = vpop.xlane.xlu0 %1615  ;;  %1873 = vadd.xlane.f32.xlu0 %v1872_v3  ;;  %1990 = vadd.xlane.f32.xlu1 %v1989_v7 }
 0x279   : > { %3241 = vpow2.f32 %v1828_v21  ;;  %v1756_v33 = vmul.f32 1.442695, %v1683_v26  ;;  %v1718_v48 = vsub.f32 %v4147_v36, %v1616_v1  ;;  %v1881_v53 = vsel %vm1481_vm1, %v4402_v6, 0.0 }
 0x27a   : > { %v4405_v52 = vpop.eup %3229  ;;  %v1508_v55 = vpop.xlane.xlu1 %1507 }
 0x27b   : > { %3243 = vpow2.f32 %v1756_v33  ;;  %v1826_v8 = vmul.f32 1.442695, %v1718_v48  ;;  %v1682_v11 = vsub.f32 %v4161_v43, %v1508_v55  ;;  %v1986_v41 = vsel %vm1481_vm1, %v4405_v52, 0.0 }
 0x27c   : > { %v4412_v9 = vpop.eup %3231  ;;  %v4414_v61 = vpop.xlane.xlu0 %1624  ;;  %1987 = vadd.xlane.f32.xlu0 %v1986_v41  ;;  %1882 = vadd.xlane.f32.xlu1 %v1881_v53 }
 0x27d   : > { %3245 = vpow2.f32 %v1826_v8  ;;  %v1754_v36 = vmul.f32 1.442695, %v1682_v11  ;;  %v1992_v29 = vsel %vm1481_vm1, %v4412_v9, 0.0 }
 0x27e   : > { %v4416_v34 = vpop.eup %3233  ;;  %v1631_v42 = vpop.xlane.xlu1 %1630 }
 0x27f   : > { %3247 = vpow2.f32 %v1754_v36  ;;  %v1723_v62 = vsub.f32 %v4165_v44, %v1631_v42  ;;  %v1995_v43 = vsel %vm1481_vm1, %v4416_v34, 0.0 }
 0x280   : > { %v4423_v63 = vpop.eup %3235  ;;  %v4425_v2 = vpop.xlane.xlu0 %1621  ;;  %1996 = vadd.xlane.f32.xlu0 %v1995_v43  ;;  %1993 = vadd.xlane.f32.xlu1 %v1992_v29 }
 0x281   : > { %v1836_v7 = vmul.f32 1.442695, %v1723_v62  ;;  %v1887_v1 = vsel %vm1481_vm1, %v4423_v63, 0.0 }
 0x282   : > { %v4427_v21 = vpop.eup %3237  ;;  %v1514_v26 = vpop.xlane.xlu1 %1513 }
 0x283   : > { %3249 = vpow2.f32 %v1836_v7  ;;  %v1684_v3 = vsub.f32 %v4171_v51, %v1514_v26  ;;  %v1878_v44 = vsel %vm1481_vm1, %v4427_v21, 0.0 }
 0x284   : > { %v4434_v33 = vpop.eup %3239  ;;  %v1517_v48 = vpop.xlane.xlu0 %1516  ;;  %1879 = vadd.xlane.f32.xlu0 %v1878_v44  ;;  %1888 = vadd.xlane.f32.xlu1 %v1887_v1 }
 0x285   : > { %v1758_v55 = vmul.f32 1.442695, %v1684_v3  ;;  %v1685_v53 = vsub.f32 %v4167_v45, %v1517_v48  ;;  %v1884_v51 = vsel %vm1481_vm1, %v4434_v33, 0.0 }
 0x286   : > { %v4437_v8 = vpop.eup %3241  ;;  %v1520_v11 = vpop.xlane.xlu1 %1519 }
 0x287   : > { %3251 = vpow2.f32 %v1758_v55  ;;  %v1760_v41 = vmul.f32 1.442695, %v1685_v53  ;;  %v1686_v36 = vsub.f32 %v4185_v46, %v1520_v11  ;;  %v2001_v42 = vsel %vm1481_vm1, %v4437_v8, 0.0 }
 0x288   : > { %v4444_v62 = vpop.eup %3243  ;;  %v1628_v43 = vpop.xlane.xlu0 %1627  ;;  %2002 = vadd.xlane.f32.xlu0 %v2001_v42  ;;  %1885 = vadd.xlane.f32.xlu1 %v1884_v51 }
 0x289   : > { %3253 = vpow2.f32 %v1760_v41  ;;  %v1762_v45 = vmul.f32 1.442695, %v1686_v36  ;;  %v1722_v29 = vsub.f32 %v4175_v12, %v1628_v43  ;;  %v1893_v3 = vsel %vm1481_vm1, %v4444_v62, 0.0 }
 0x28a   : > { %v4447_v7 = vpop.eup %3245  ;;  %v1535_v26 = vpop.xlane.xlu1 %1534 }
 0x28b   : > { %3255 = vpow2.f32 %v1762_v45  ;;  %v1834_v46 = vmul.f32 1.442695, %v1722_v29  ;;  %v1691_v44 = vsub.f32 %v4209_v58, %v1535_v26  ;;  %v1998_v1 = vsel %vm1481_vm1, %v4447_v7, 0.0 }
 0x28c   : > { %v4454_v48 = vpop.eup %3247  ;;  %v1523_v55 = vpop.xlane.xlu0 %1522  ;;  %1999 = vadd.xlane.f32.xlu0 %v1998_v1  ;;  %1894 = vadd.xlane.f32.xlu1 %v1893_v3 }
 0x28d   : > { %3257 = vpow2.f32 %v1834_v46  ;;  %v1772_v12 = vmul.f32 1.442695, %v1691_v44  ;;  %v1687_v53 = vsub.f32 %v4177_v13, %v1523_v55  ;;  %v1890_v41 = vsel %vm1481_vm1, %v4454_v48, 0.0 }
 0x28e   : > { %v4457_v11 = vpop.xlane.xlu1 %1645 }
 0x28f   : > { %3259 = vpow2.f32 %v1772_v12  ;;  %v1764_v51 = vmul.f32 1.442695, %v1687_v53 }
 0x290   : > { %v4461_v58 = vpop.eup %3249  ;;  %v1637_v36 = vpop.xlane.xlu0 %1636  ;;  %1891 = vadd.xlane.f32.xlu0 %v1890_v41 }
 0x291   : > { %3261 = vpow2.f32 %v1764_v51  ;;  %v1725_v42 = vsub.f32 %v4183_v31, %v1637_v36  ;;  %v2013_v43 = vsel %vm1481_vm1, %v4461_v58, 0.0 }
 0x292   : > { %v1655_v45 = vpop.xlane.xlu1 %1654  ;;  %2014 = vadd.xlane.f32.xlu1 %v2013_v43 }
 0x293   : > { %v1840_v13 = vmul.f32 1.442695, %v1725_v42  ;;  %v1731_v29 = vsub.f32 %v4231_v40, %v1655_v45 }
 0x294   : > { %v4467_v26 = vpop.eup %3251  ;;  %v1634_v3 = vpop.xlane.xlu0 %1633 }
 0x295   : > { %3263 = vpow2.f32 %v1840_v13  ;;  %v1852_v46 = vmul.f32 1.442695, %v1731_v29  ;;  %v1724_v44 = vsub.f32 %v4191_v32, %v1634_v3  ;;  %v1896_v1 = vsel %vm1481_vm1, %v4467_v26, 0.0 }
 0x296   : > { %v4472_v55 = vpop.eup %3253  ;;  %v1661_v31 = vpop.xlane.xlu1 %1660  ;;  %1897 = vadd.xlane.f32.xlu1 %v1896_v1 }
 0x297   : > { %3265 = vpow2.f32 %v1852_v46  ;;  %v1838_v12 = vmul.f32 1.442695, %v1724_v44  ;;  %v1733_v53 = vsub.f32 %v4247_v19, %v1661_v31  ;;  %v1899_v40 = vsel %vm1481_vm1, %v4472_v55, 0.0 }
 0x298   : > { %v4477_v51 = vpop.eup %3255  ;;  %v1529_v41 = vpop.xlane.xlu0 %1528  ;;  %1900 = vadd.xlane.f32.xlu0 %v1899_v40 }
 0x299   : > { %3267 = vpow2.f32 %v1838_v12  ;;  %v1856_v32 = vmul.f32 1.442695, %v1733_v53  ;;  %v1689_v36 = vsub.f32 %v4193_v18, %v1529_v41  ;;  %v1902_v42 = vsel %vm1481_vm1, %v4477_v51, 0.0 }
 0x29a   : > { %v4482_v43 = vpop.eup %3257  ;;  %v1658_v45 = vpop.xlane.xlu1 %1657  ;;  %1903 = vadd.xlane.f32.xlu1 %v1902_v42 }
 0x29b   : > { %3269 = vpow2.f32 %v1856_v32  ;;  %v1768_v19 = vmul.f32 1.442695, %v1689_v36  ;;  %v1732_v13 = vsub.f32 %v4255_v23, %v1658_v45  ;;  %v2010_v29 = vsel %vm1481_vm1, %v4482_v43, 0.0 }
 0x29c   : > { %v4487_v3 = vpop.eup %3259  ;;  %v1643_v46 = vpop.xlane.xlu0 %1642  ;;  %2011 = vadd.xlane.f32.xlu0 %v2010_v29 }
 0x29d   : > { %3271 = vpow2.f32 %v1768_v19  ;;  %v1854_v18 = vmul.f32 1.442695, %v1732_v13  ;;  %v1727_v44 = vsub.f32 %v4199_v22, %v1643_v46  ;;  %v1917_v1 = vsel %vm1481_vm1, %v4487_v3, 0.0 }
 0x29e   : > { %v4492_v31 = vpop.eup %3261  ;;  %v4494_v12 = vpop.xlane.xlu1 %1666  ;;  %1918 = vadd.xlane.f32.xlu1 %v1917_v1 }
 0x29f   : > { %3273 = vpow2.f32 %v1854_v18  ;;  %v1844_v23 = vmul.f32 1.442695, %v1727_v44  ;;  %v1905_v53 = vsel %vm1481_vm1, %v4492_v31, 0.0 }
 0x2a0   : > { %v1526_v40 = vpop.xlane.xlu0 %1525  ;;  %1906 = vadd.xlane.f32.xlu0 %v1905_v53 }
 0x2a1   : > { %3275 = vpow2.f32 %v1844_v23  ;;  %v1688_v41 = vsub.f32 %v4201_v54, %v1526_v40 }
 0x2a2   : > { %v4499_v32 = vpop.eup %3263  ;;  %v1664_v22 = vpop.xlane.xlu1 %1663 }
 0x2a3   : > { %v1766_v36 = vmul.f32 1.442695, %v1688_v41  ;;  %v1734_v42 = vsub.f32 %v4271_v14, %v1664_v22  ;;  %v2019_v45 = vsel %vm1481_vm1, %v4499_v32, 0.0 }
 0x2a4   : > { %v4504_v19 = vpop.eup %3265  ;;  %v1640_v13 = vpop.xlane.xlu0 %1639  ;;  %2020 = vadd.xlane.f32.xlu0 %v2019_v45 }
 0x2a5   : > { %3277 = vpow2.f32 %v1766_v36  ;;  %v1858_v29 = vmul.f32 1.442695, %v1734_v42  ;;  %v1726_v46 = vsub.f32 %v4207_v57, %v1640_v13  ;;  %v2037_v54 = vsel %vm1481_vm1, %v4504_v19, 0.0 }
 0x2a6   : > { %v4509_v18 = vpop.eup %3267  ;;  %v1559_v44 = vpop.xlane.xlu1 %1558  ;;  %2038 = vadd.xlane.f32.xlu1 %v2037_v54 }
 0x2a7   : > { %3279 = vpow2.f32 %v1858_v29  ;;  %v1842_v14 = vmul.f32 1.442695, %v1726_v46  ;;  %v1699_v1 = vsub.f32 %v4273_v17, %v1559_v44  ;;  %v2016_v23 = vsel %vm1481_vm1, %v4509_v18, 0.0 }
 0x2a8   : > { %v4514_v53 = vpop.eup %3269  ;;  %v4516_v40 = vpop.xlane.xlu0 %1648  ;;  %2017 = vadd.xlane.f32.xlu0 %v2016_v23 }
 0x2a9   : > { %5060 = vst [vmem:[#allocation31_spill] sm:$0xff] %v4514_v53  ;;  %3281 = vpow2.f32 %v1842_v14  ;;  %v1788_v57 = vmul.f32 1.442695, %v1699_v1  ;;  %v2043_v41 = vsel %vm1481_vm1, %v4514_v53, 0.0 }
 0x2aa   : > { %v4520_v22 = vpop.eup %3271  ;;  %v4522_v36 = vpop.xlane.xlu1 %1672  ;;  %2044 = vadd.xlane.f32.xlu1 %v2043_v41 }
 0x2ab   : > { %3283 = vpow2.f32 %v1788_v57  ;;  %v1911_v17 = vsel %vm1481_vm1, %v4520_v22, 0.0 }
 0x2ac   : > { %v4526_v42 = vpop.eup %3273  ;;  %v1532_v45 = vpop.xlane.xlu0 %1531  ;;  %1912 = vadd.xlane.f32.xlu0 %v1911_v17 }
 0x2ad   : > { %v1690_v13 = vsub.f32 %v4217_v60, %v1532_v45  ;;  %v2040_v29 = vsel %vm1481_vm1, %v4526_v42, 0.0 }
 0x2ae   : > { %v4531_v46 = vpop.eup %3275  ;;  %v4533_v54 = vpop.xlane.xlu1 %1669  ;;  %2041 = vadd.xlane.f32.xlu1 %v2040_v29 }
 0x2af   : > { %v1770_v44 = vmul.f32 1.442695, %v1690_v13  ;;  %v2025_v14 = vsel %vm1481_vm1, %v4531_v46, 0.0 }
 0x2b0   : > { %v1541_v1 = vpop.xlane.xlu0 %1540  ;;  %2026 = vadd.xlane.f32.xlu0 %v2025_v14 }
 0x2b1   : > { %3285 = vpow2.f32 %v1770_v44  ;;  %v1693_v23 = vsub.f32 %v4225_v30, %v1541_v1 }
 0x2b2   : > { %v4538_v57 = vpop.eup %3277  ;;  %v1562_v60 = vpop.xlane.xlu1 %1561 }
 0x2b3   : > { %v1776_v41 = vmul.f32 1.442695, %v1693_v23  ;;  %v1700_v17 = vsub.f32 %v4295_v5, %v1562_v60  ;;  %v1908_v45 = vsel %vm1481_vm1, %v4538_v57, 0.0 }
 0x2b4   : > { %v4543_v37 = vpop.eup %3279  ;;  %v1538_v13 = vpop.xlane.xlu0 %1537  ;;  %1909 = vadd.xlane.f32.xlu0 %v1908_v45 }
 0x2b5   : > { %5061 = vst [vmem:[#allocation32_spill] sm:$0xff] %v4543_v37  ;;  %3287 = vpow2.f32 %v1776_v41  ;;  %v1790_v29 = vmul.f32 1.442695, %v1700_v17  ;;  %v1692_v14 = vsub.f32 %v4233_v25, %v1538_v13  ;;  %v2046_v30 = vsel %vm1481_vm1, %v4543_v37, 0.0 }
 0x2b6   : > { %v4548_v44 = vpop.eup %3281  ;;  %v1571_v1 = vpop.xlane.xlu1 %1570  ;;  %2047 = vadd.xlane.f32.xlu1 %v2046_v30 }
 0x2b7   : > { %3289 = vpow2.f32 %v1790_v29  ;;  %v1774_v5 = vmul.f32 1.442695, %v1692_v14  ;;  %v1703_v23 = vsub.f32 %v4301_v47, %v1571_v1  ;;  %v2022_v60 = vsel %vm1481_vm1, %v4548_v44, 0.0 }
 0x2b8   : > { %v4553_v53 = vpop.eup %3283  ;;  %v1652_v41 = vpop.xlane.xlu0 %1651  ;;  %2023 = vadd.xlane.f32.xlu0 %v2022_v60 }
 0x2b9   : > { %3291 = vpow2.f32 %v1774_v5  ;;  %v1796_v25 = vmul.f32 1.442695, %v1703_v23  ;;  %v1730_v17 = vsub.f32 %v4239_v15, %v1652_v41  ;;  %v1941_v45 = vsel %vm1481_vm1, %v4553_v53, 0.0 }
 0x2ba   : > { %v1568_v13 = vpop.xlane.xlu1 %1567  ;;  %1942 = vadd.xlane.f32.xlu1 %v1941_v45  ;;  %v1735_v41 = vsub.f32 %v4263_v35, %v4494_v12  ;;  %v1728_v35 = vsub.f32 %v4223_v27, %v4457_v11 }
 0x2bb   : > { %3293 = vpow2.f32 %v1796_v25  ;;  %v1850_v29 = vmul.f32 1.442695, %v1730_v17  ;;  %v1702_v47 = vsub.f32 %v4307_v4, %v1568_v13 }
 0x2bc   : > { %v1547_v14 = vpop.xlane.xlu0 %1546  ;;  %v1860_v12 = vmul.f32 1.442695, %v1735_v41  ;;  %v1846_v11 = vmul.f32 1.442695, %v1728_v35  ;;  %v5062_v41 = vld [vmem:[#allocation20_spill] sm:$0xff] }
 0x2bd   : > { %3295 = vpow2.f32 %v1850_v29  ;;  %v1794_v30 = vmul.f32 1.442695, %v1702_v47  ;;  %v1695_v1 = vsub.f32 %v4241_v16, %v1547_v14 }
 0x2be   : > { %v4560_v37 = vpop.eup %3285  ;;  %v1577_v5 = vpop.xlane.xlu1 %1576 }
 0x2bf   : > { %3297 = vpow2.f32 %v1794_v30  ;;  %v1780_v23 = vmul.f32 1.442695, %v1695_v1  ;;  %v1705_v15 = vsub.f32 %v4313_v49, %v1577_v5  ;;  %v1914_v60 = vsel %vm1481_vm1, %v4560_v37, 0.0 }
 0x2c0   : > { %v1544_v25 = vpop.xlane.xlu0 %1543  ;;  %1915 = vadd.xlane.f32.xlu0 %v1914_v60  ;;  %v1736_v60 = vsub.f32 %v4293_v10, %v4533_v54  ;;  %v5063_v10 = vld [vmem:[#allocation22_spill] sm:$0xff] }
 0x2c1   : > { %3299 = vpow2.f32 %v1780_v23  ;;  %v1800_v4 = vmul.f32 1.442695, %v1705_v15  ;;  %v1694_v17 = vsub.f32 %v4249_v20, %v1544_v25  ;;  %v1737_v54 = vsub.f32 %v5063_v10, %v4522_v36 }
 0x2c2   : > { %v4568_v16 = vpop.eup %3287  ;;  %v1574_v45 = vpop.xlane.xlu1 %1573 }
 0x2c3   : > { %3301 = vpow2.f32 %v1800_v4  ;;  %v1778_v13 = vmul.f32 1.442695, %v1694_v17  ;;  %v1704_v29 = vsub.f32 %v4319_v38, %v1574_v45  ;;  %v1923_v49 = vsel %vm1481_vm1, %v4568_v16, 0.0 }
 0x2c4   : > { %v4573_v47 = vpop.eup %3289  ;;  %v1553_v14 = vpop.xlane.xlu0 %1552  ;;  %1924 = vadd.xlane.f32.xlu0 %v1923_v49  ;;  %v1862_v49 = vmul.f32 1.442695, %v1736_v60  ;;  %v1864_v36 = vmul.f32 1.442695, %v1737_v54  ;;  %v5066_v60 = vld [vmem:[#allocation25_spill] sm:$0xff] }
 0x2c5   : > { %3303 = vpow2.f32 %v1778_v13  ;;  %v1798_v20 = vmul.f32 1.442695, %v1704_v29  ;;  %v1697_v30 = vsub.f32 %v4257_v50, %v1553_v14  ;;  %v1944_v1 = vsel %vm1481_vm1, %v4573_v47, 0.0  ;;  %v5064_v14 = vld [vmem:[#allocation21_spill] sm:$0xff] }
 0x2c6   : > { %v4580_v5 = vpop.eup %3291  ;;  %v1580_v38 = vpop.xlane.xlu1 %1579  ;;  %1945 = vadd.xlane.f32.xlu1 %v1944_v1 }
 0x2c7   : > { %3305 = vpow2.f32 %v1798_v20  ;;  %v1784_v23 = vmul.f32 1.442695, %v1697_v30  ;;  %v1920_v15 = vsel %vm1481_vm1, %v4580_v5, 0.0 }
 0x2c8   : > { %v4584_v27 = vpop.eup %3293  ;;  %3307 = vpow2.f32 %v1860_v12  ;;  %v1550_v50 = vpop.xlane.xlu0 %1549  ;;  %1921 = vadd.xlane.f32.xlu0 %v1920_v15 }
 0x2c9   : > { %3309 = vpow2.f32 %v1784_v23  ;;  %v1696_v25 = vsub.f32 %v5062_v41, %v1550_v50  ;;  %v1953_v4 = vsel %vm1481_vm1, %v4584_v27, 0.0  ;;  %v1706_v50 = vsub.f32 %v5066_v60, %v1580_v38 }
 0x2ca   : > { %v4591_v17 = vpop.eup %3295  ;;  %1954 = vadd.xlane.f32.xlu1 %v1953_v4  ;;  %3311 = vpow2.f32 %v1846_v11  ;;  %v1589_v35 = vpop.xlane.xlu1 %1588 }
 0x2cb   : > { %v1782_v45 = vmul.f32 1.442695, %v1696_v25  ;;  %v2034_v13 = vsel %vm1481_vm1, %v4591_v17, 0.0  ;;  %v5067_v25 = vld [vmem:[#allocation23_spill] sm:$0xff] }
 0x2cc   : > { %v4595_v29 = vpop.eup %3297  ;;  %v1556_v12 = vpop.xlane.xlu0 %1555  ;;  %2035 = vadd.xlane.f32.xlu0 %v2034_v13 }
 0x2cd   : > { %3313 = vpow2.f32 %v1782_v45  ;;  %v1698_v20 = vsub.f32 %v5064_v14, %v1556_v12  ;;  %v1950_v30 = vsel %vm1481_vm1, %v4595_v29, 0.0  ;;  %v5068_v12 = vld [vmem:[#allocation18_spill] sm:$0xff] }
 0x2ce   : > { %v4602_v1 = vpop.eup %3299  ;;  %1951 = vadd.xlane.f32.xlu1 %v1950_v30  ;;  %3315 = vpow2.f32 %v1862_v49  ;;  %v1586_v10 = vpop.xlane.xlu1 %1585  ;;  %v1720_v14 = vsub.f32 %v5068_v12, %v4425_v2  ;;  %v1802_v49 = vmul.f32 1.442695, %v1706_v50 }
 0x2cf   : > { %v1786_v23 = vmul.f32 1.442695, %v1698_v20  ;;  %v1929_v15 = vsel %vm1481_vm1, %v4602_v1, 0.0 }
 0x2d0   : > { %v4606_v11 = vpop.eup %3301  ;;  %v1565_v41 = vpop.xlane.xlu0 %1564  ;;  %1930 = vadd.xlane.f32.xlu0 %v1929_v15  ;;  %v5069_v15 = vld [vmem:[#allocation26_spill] sm:$0xff] }
 0x2d1   : > { %5065 = vst [vmem:[#allocation20_spill] sm:$0xff] %v4606_v11  ;;  %3317 = vpow2.f32 %v1786_v23  ;;  %v1701_v4 = vsub.f32 %v5067_v25, %v1565_v41  ;;  %v1959_v45 = vsel %vm1481_vm1, %v4606_v11, 0.0  ;;  %v1709_v60 = vsub.f32 %v5069_v15, %v1589_v35  ;;  %v5070_v41 = vld [vmem:[#allocation24_spill] sm:$0xff] }
 0x2d2   : > { %v4612_v13 = vpop.eup %3303  ;;  %1960 = vadd.xlane.f32.xlu1 %v1959_v45  ;;  %3319 = vpow2.f32 %v1864_v36  ;;  %v5071_v45 = vld [vmem:[#allocation16_spill] sm:$0xff]  ;;  %v1830_v36 = vmul.f32 1.442695, %v1720_v14  ;;  %v1595_v11 = vpop.xlane.xlu1 %1594  ;;  %v5074_v14 = vld [vmem:[#allocation17_spill] sm:$0xff] }
 0x2d3   : > { %v1792_v20 = vmul.f32 1.442695, %v1701_v4  ;;  %v1926_v54 = vsel %vm1481_vm1, %v4612_v13, 0.0  ;;  %v1713_v12 = vsub.f32 %v5071_v45, %v4363_v0 }
 0x2d4   : > { %v4618_v38 = vpop.eup %3305  ;;  %1927 = vadd.xlane.f32.xlu0 %v1926_v54  ;;  %v1583_v30 = vpop.xlane.xlu0 %1582 }
 0x2d5   : > { %v4620_v23 = vpop.eup %3307  ;;  %3321 = vpow2.f32 %v1792_v20  ;;  %v1707_v25 = vsub.f32 %v5070_v41, %v1583_v30  ;;  %v1956_v2 = vsel %vm1481_vm1, %v4618_v38, 0.0  ;;  %v1808_v20 = vmul.f32 1.442695, %v1709_v60  ;;  %v5073_v30 = vld [vmem:[#allocation27_spill] sm:$0xff]  ;;  %v5075_v60 = vld [vmem:[#allocation28_spill] sm:$0xff] }
 0x2d6   : > { %v4626_v4 = vpop.eup %3309  ;;  %1957 = vadd.xlane.f32.xlu1 %v1956_v2  ;;  %3323 = vpow2.f32 %v1802_v49  ;;  %v1708_v15 = vsub.f32 %v5073_v30, %v1586_v10  ;;  %v2049_v41 = vsel %vm1481_vm1, %v4620_v23, 0.0  ;;  %v1816_v0 = vmul.f32 1.442695, %v1713_v12  ;;  %v1592_v12 = vpop.xlane.xlu1 %1591 }
 0x2d7   : > { %v1804_v50 = vmul.f32 1.442695, %v1707_v25  ;;  %v1935_v54 = vsel %vm1481_vm1, %v4626_v4, 0.0  ;;  %v4632_v35 = vpop.eup %3311  ;;  %v1721_v25 = vsub.f32 %v5074_v14, %v4414_v61 }
 0x2d8   : > { %1936 = vadd.xlane.f32.xlu0 %v1935_v54  ;;  %5072 = vst [vmem:[#allocation22_spill] sm:$0xff] %v4632_v35  ;;  %v1806_v10 = vmul.f32 1.442695, %v1708_v15  ;;  %v2028_v54 = vsel %vm1481_vm1, %v4632_v35, 0.0  ;;  %v5078_v15 = vld [vmem:[#allocation29_spill] sm:$0xff] }
 0x2d9   : > { %3325 = vpow2.f32 %v1804_v50  ;;  %v1711_v50 = vsub.f32 %v5075_v60, %v1595_v11  ;;  %v1832_v61 = vmul.f32 1.442695, %v1721_v25 }
 0x2da   : > { %v4637_v2 = vpop.eup %3313  ;;  %2050 = vadd.xlane.f32.xlu1 %v2049_v41  ;;  %3327 = vpow2.f32 %v1830_v36  ;;  %v5076_v36 = vld [vmem:[#allocation19_spill] sm:$0xff] }
 0x2db   : > { %v1932_v49 = vsel %vm1481_vm1, %v4637_v2, 0.0  ;;  %v4643_v45 = vpop.eup %3315  ;;  %3329 = vpow2.f32 %v1808_v20  ;;  %v1729_v41 = vsub.f32 %v5076_v36, %v4516_v40  ;;  %v1812_v11 = vmul.f32 1.442695, %v1711_v50 }
 0x2dc   : > { %1933 = vadd.xlane.f32.xlu0 %v1932_v49  ;;  %3331 = vpow2.f32 %v1816_v0  ;;  %v1710_v49 = vsub.f32 %v5078_v15, %v1592_v12  ;;  %v2052_v60 = vsel %vm1481_vm1, %v4643_v45, 0.0 }
 0x2dd   : > { %3333 = vpow2.f32 %v1806_v10  ;;  %v1848_v0 = vmul.f32 1.442695, %v1729_v41 }
 0x2de   : > { %v4648_v30 = vpop.eup %3317  ;;  %2029 = vadd.xlane.f32.xlu1 %v2028_v54  ;;  %3335 = vpow2.f32 %v1832_v61  ;;  %v1810_v54 = vmul.f32 1.442695, %v1710_v49 }
 0x2df   : > { %v1938_v14 = vsel %vm1481_vm1, %v4648_v30, 0.0  ;;  %v4654_v20 = vpop.eup %3319  ;;  %3337 = vpow2.f32 %v1812_v11 }
 0x2e0   : > { %1939 = vadd.xlane.f32.xlu0 %v1938_v14  ;;  %5077 = vst [vmem:[#allocation21_spill] sm:$0xff] %v4654_v20  ;;  %v2055_v10 = vsel %vm1481_vm1, %v4654_v20, 0.0  ;;  %3339 = vpow2.f32 %v1848_v0 }
 0x2e1   : > { %3341 = vpow2.f32 %v1810_v54 }
 0x2e2   : > { %v4659_v35 = vpop.eup %3321  ;;  %2053 = vadd.xlane.f32.xlu1 %v2052_v60 }
 0x2e3   : > { %v1947_v40 = vsel %vm1481_vm1, %v4659_v35, 0.0  ;;  %v4663_v25 = vpop.eup %3323 }
 0x2e4   : > { %1948 = vadd.xlane.f32.xlu0 %v1947_v40  ;;  %v1962_v36 = vsel %vm1481_vm1, %v4663_v25, 0.0 }
 0x2e6   : > { %v4667_v50 = vpop.eup %3325  ;;  %2056 = vadd.xlane.f32.xlu1 %v2055_v10 }
 0x2e7   : > { %5079 = vst [vmem:[#allocation25_spill] sm:$0xff] %v4667_v50  ;;  %v1965_v12 = vsel %vm1481_vm1, %v4667_v50, 0.0  ;;  %v4671_v61 = vpop.eup %3327 }
 0x2e8   : > { %5080 = vst [vmem:[#allocation23_spill] sm:$0xff] %v4671_v61  ;;  %1966 = vadd.xlane.f32.xlu0 %v1965_v12  ;;  %v4675_v41 = vpop.eup %3329  ;;  %v2004_v14 = vsel %vm1481_vm1, %v4671_v61, 0.0 }
 0x2e9   : > { %5081 = vst [vmem:[#allocation18_spill] sm:$0xff] %v4675_v41  ;;  %v4679_v11 = vpop.eup %3331  ;;  %v1971_v15 = vsel %vm1481_vm1, %v4675_v41, 0.0 }
 0x2ea   : > { %1963 = vadd.xlane.f32.xlu1 %v1962_v36  ;;  %5082 = vst [vmem:[#allocation26_spill] sm:$0xff] %v4679_v11  ;;  %v4683_v49 = vpop.eup %3333  ;;  %v1983_v60 = vsel %vm1481_vm1, %v4679_v11, 0.0 }
 0x2eb   : > { %5083 = vst [vmem:[#allocation24_spill] sm:$0xff] %v4683_v49  ;;  %v4687_v0 = vpop.eup %3335  ;;  %v1968_v40 = vsel %vm1481_vm1, %v4683_v49, 0.0 }
 0x2ec   : > { %2005 = vadd.xlane.f32.xlu0 %v2004_v14  ;;  %5084 = vst [vmem:[#allocation16_spill] sm:$0xff] %v4687_v0  ;;  %v4691_v54 = vpop.eup %3337  ;;  %v2007_v10 = vsel %vm1481_vm1, %v4687_v0, 0.0 }
 0x2ed   : > { %5085 = vst [vmem:[#allocation27_spill] sm:$0xff] %v4691_v54  ;;  %v4695_v12 = vpop.eup %3339  ;;  %v1977_v14 = vsel %vm1481_vm1, %v4691_v54, 0.0 }
 0x2ee   : > { %1972 = vadd.xlane.f32.xlu1 %v1971_v15  ;;  %5086 = vst [vmem:[#allocation17_spill] sm:$0xff] %v4695_v12  ;;  %v4699_v15 = vpop.eup %3341 }
 0x2ef   : > { %5087 = vst [vmem:[#allocation28_spill] sm:$0xff] %v4699_v15 }
 0x2f0   : > { %1984 = vadd.xlane.f32.xlu0 %v1983_v60  ;;  %v2031_v60 = vsel %vm1481_vm1, %v4695_v12, 0.0  ;;  %v5028_v12 = vmov 0.0  }
 0x2f1   : > { %3114 = vmatprep.subr.mxu1 %v5028_v12 }
 0x2f2   : > { %1969 = vadd.xlane.f32.xlu1 %v1968_v40  ;;  %v1974_v40 = vsel %vm1481_vm1, %v4699_v15, 0.0 }
 0x2f4   : > { %2008 = vadd.xlane.f32.xlu0 %v2007_v10 }
 0x2f5   : > { %v1871_v36 = vpop.xlane.xlu1 %1870 }
 0x2f6   : > { %1978 = vadd.xlane.f32.xlu1 %v1977_v14  ;;  %3343 = vrcp.f32 %v1871_v36 }
 0x2f8   : > { %2032 = vadd.xlane.f32.xlu0 %v2031_v60 }
 0x2f9   : > { %v4703_v11 = vpop.xlane.xlu1 %1981 }
 0x2fa   : > { %1975 = vadd.xlane.f32.xlu1 %v1974_v40 }
 0x2fd   : > { %v1868_v41 = vpop.xlane.xlu0 %1867  ;;  %v1877_v10 = vpop.xlane.xlu1 %1876 }
 0x2fe   : > { %3345 = vrcp.f32 %v1868_v41  ;;  %v5088_v41 = vld [vmem:[#allocation9_spill] sm:$0xff] }
 0x2ff   : > { %3347 = vrcp.f32 %v1877_v10 }
 0x301   : > { %v1874_v0 = vpop.xlane.xlu0 %1873  ;;  %v1991_v54 = vpop.xlane.xlu1 %1990 }
 0x302   : > { %3349 = vrcp.f32 %v1874_v0 }
 0x303   : > { %3351 = vrcp.f32 %v1991_v54  ;;  %v3344_v60 = vpop.eup %3343 }
 0x304   : > { %v2123_v36 = vmul.f32 %v3344_v60, %v4371_v59  ;;  %v5089_v59 = vld [vmem:[#allocation8_spill] sm:$0xff]  ;;  %v5090_v60 = vld [vmem:[#allocation10_spill] sm:$0xff] }
 0x305   : > { %v1988_v14 = vpop.xlane.xlu0 %1987  ;;  %v1883_v49 = vpop.xlane.xlu1 %1882 }
 0x306   : > { %3353 = vrcp.f32 %v1988_v14  ;;  %v2187_v12 = vsel %vm1481_vm1, %v2123_v36, 0.0 }
 0x309   : > { %v1997_v20 = vpop.xlane.xlu0 %1996  ;;  %v1994_v50 = vpop.xlane.xlu1 %1993 }
 0x30a   : > { %3355 = vrcp.f32 %v1997_v20 }
 0x30b   : > { %v3346_v40 = vpop.eup %3345  ;;  %3357 = vrcp.f32 %v1994_v50  ;;  %2388 = vrot.lane.b32.xlu1 %v5088_v41, %s3536_s19 }
 0x30c   : > { %v2122_v0 = vmul.f32 %v3346_v40, %v4385_v24  ;;  %3359 = vrcp.f32 %v1883_v49  ;;  %v3348_v54 = vpop.eup %3347 }
 0x30d   : > { %v1880_v10 = vpop.xlane.xlu0 %1879  ;;  %v1889_v14 = vpop.xlane.xlu1 %1888  ;;  %v2125_v24 = vmul.f32 %v3348_v54, %v4382_v28 }
 0x30e   : > { %v2186_v15 = vsel %vm1481_vm1, %v2122_v0, 0.0  ;;  %3361 = vrcp.f32 %v1880_v10  ;;  %2390 = vrot.lane.b32.xlu0 %v5089_v59, %s3536_s19  ;;  %v5091_v10 = vld [vmem:[#allocation12_spill] sm:$0xff] }
 0x30f   : > { %v3350_v20 = vpop.eup %3349  ;;  %v2188_v50 = vadd.f32 %v2187_v12, %v2186_v15  ;;  %2386 = vrot.lane.b32.xlu1 %v5090_v60, %s3536_s19  ;;  %3363 = vrcp.f32 %v1889_v14  ;;  %v5092_v15 = vld [vmem:[#allocation11_spill] sm:$0xff]  ;;  %v2191_v28 = vsel %vm1481_vm1, %v2125_v24, 0.0 }
 0x310   : > { %v3352_v41 = vpop.eup %3351  ;;  %v2124_v49 = vmul.f32 %v3350_v20, %v4395_v39 }
 0x311   : > { %v2003_v40 = vpop.xlane.xlu0 %2002  ;;  %v1886_v61 = vpop.xlane.xlu1 %1885  ;;  %v2163_v0 = vmul.f32 %v3352_v41, %v4392_v56  ;;  %v5093_v41 = vld [vmem:[#allocation14_spill] sm:$0xff] }
 0x312   : > { %v2189_v36 = vsel %vm1481_vm1, %v2124_v49, 0.0  ;;  %2382 = vrot.lane.b32.xlu0 %v5091_v10, %s3536_s19  ;;  %3365 = vrcp.f32 %v1886_v61  ;;  %v5094_v49 = vld [vmem:[#allocation13_spill] sm:$0xff] }
 0x313   : > { %v3354_v59 = vpop.eup %3353  ;;  %v2190_v12 = vadd.f32 %v2189_v36, %v2188_v50  ;;  %2384 = vrot.lane.b32.xlu1 %v5092_v15, %s3536_s19  ;;  %3367 = vrcp.f32 %v2003_v40  ;;  %v2292_v60 = vsel %vm1481_vm1, %v2163_v0, 0.0 }
 0x314   : > { %v2162_v39 = vmul.f32 %v3354_v59, %v4405_v52 }
 0x315   : > { %v2192_v54 = vadd.f32 %v2191_v28, %v2190_v12  ;;  %v2000_v14 = vpop.xlane.xlu0 %1999  ;;  %v1895_v20 = vpop.xlane.xlu1 %1894  ;;  %v5095_v12 = vld [vmem:[#allocation15_spill] sm:$0xff] }
 0x316   : > { %v2291_v56 = vsel %vm1481_vm1, %v2162_v39, 0.0  ;;  %3369 = vrcp.f32 %v2000_v14  ;;  %2378 = vrot.lane.b32.xlu0 %v5093_v41, %s3536_s19 }
 0x317   : > { %v3356_v61 = vpop.eup %3355  ;;  %v2293_v50 = vadd.f32 %v2292_v60, %v2291_v56  ;;  %3371 = vrcp.f32 %v1895_v20  ;;  %2380 = vrot.lane.b32.xlu1 %v5094_v49, %s3536_s19  ;;  %v5096_v56 = vmov 0.0  }
 0x318   : > { %v3358_v24 = vpop.eup %3357  ;;  %v2165_v40 = vmul.f32 %v3356_v61, %v4416_v34  ;;  %3130 = vmatprep.mubr.msk.f32.mxu1 %vm3537_vm2, %v5096_v56 }
 0x319   : > { %v3360_v52 = vpop.eup %3359  ;;  %v2164_v36 = vmul.f32 %v3358_v24, %v4412_v9  ;;  %v1892_v10 = vpop.xlane.xlu0 %1891 }
 0x31a   : > { %3373 = vrcp.f32 %v1892_v10  ;;  %v2127_v28 = vmul.f32 %v3360_v52, %v4402_v6  ;;  %v2296_v20 = vsel %vm1481_vm1, %v2165_v40, 0.0 }
 0x31b   : > { %v3362_v0 = vpop.eup %3361  ;;  %v2294_v59 = vsel %vm1481_vm1, %v2164_v36, 0.0  ;;  %2376 = vrot.lane.b32.xlu1 %v5095_v12, %s3536_s19  ;;  %v2015_v15 = vpop.xlane.xlu1 %2014  ;;  %s2674_s19 = sshll.u32 %s393_s29, 4  ;;  %s2675_s19 = int_to_ptr.vmem [resolvable:$true] %s2674_s19 }
 0x31c   : > { %v2295_v39 = vadd.f32 %v2294_v59, %v2293_v50  ;;  %v2126_v14 = vmul.f32 %v3362_v0, %v4427_v21  ;;  %v3364_v60 = vpop.eup %3363  ;;  %v2195_v24 = vsel %vm1481_vm1, %v2127_v28, 0.0  ;;  %s3472_s22 = scalar_lea.vmem %s2675_s19, 16  ;;  %p3479_p0 = scmp.lt.s32.totalorder %s2675_s19, %s3477_s21 }
 0x31d   : > { %v2129_v50 = vmul.f32 %v3364_v60, %v4423_v63  ;;  %p3473_p11 = scmp.ne.s32.totalorder %s2675_s19, %s3472_s22  ;;  %p3480_p1 = scmp.lt.s32.totalorder %s3478_s13, %s3472_s22 }
 0x31e   : > { %v2193_v34 = vsel %vm1481_vm1, %v2126_v14, 0.0  ;;  %v2297_v9 = vadd.f32 %v2296_v20, %v2295_v39 }
 0x31f   : > { %v2194_v41 = vadd.f32 %v2193_v34, %v2192_v54  ;;  %v1898_v61 = vpop.xlane.xlu1 %1897  ;;  %v3366_v49 = vpop.eup %3365  ;;  %v2199_v39 = vsel %vm1481_vm1, %v2129_v50, 0.0  ;;  %p3474_p12 = pnand %p3473_p11, %p3637_p5  ;;  %p3481_p2 = por %p3480_p1, %p3479_p0 }
 0x320   : > { %3375 = vrcp.f32 %v1898_v61  ;;  %v3368_v6 = vpop.eup %3367  ;;  %v2128_v52 = vmul.f32 %v3366_v49, %v4434_v33 }
 0x321   : > { %v2196_v21 = vadd.f32 %v2195_v24, %v2194_v41  ;;  %3377 = vrcp.f32 %v2015_v15  ;;  %v1901_v40 = vpop.xlane.xlu0 %1900  ;;  %v2167_v54 = vmul.f32 %v3368_v6, %v4437_v8  ;;  %p3475_p13 = pneg %p3474_p12 }
 0x322   : > { %3379 = vrcp.f32 %v1901_v40  ;;  %v2197_v10 = vsel %vm1481_vm1, %v2128_v52, 0.0 }
 0x323   : > { %v3370_v36 = vpop.eup %3369  ;;  %v1904_v0 = vpop.xlane.xlu1 %1903  ;;  %v2198_v12 = vadd.f32 %v2197_v10, %v2196_v21  ;;  %v2300_v34 = vsel %vm1481_vm1, %v2167_v54, 0.0  ;;  %p3482_p3 = pnand %p3481_p2, %p3475_p13 }
 0x324   : > { %v3372_v59 = vpop.eup %3371  ;;  %v2166_v28 = vmul.f32 %v3370_v36, %v4447_v7  ;;  %3381 = vrcp.f32 %v1904_v0 }
 0x325   : > { %v2012_v63 = vpop.xlane.xlu0 %2011  ;;  %v4752_v14 = vadd.f32 %v2199_v39, %v2198_v12  ;;  %v2131_v15 = vmul.f32 %v3372_v59, %v4444_v62 }
 0x326   : > { %v2298_v33 = vsel %vm1481_vm1, %v2166_v28, 0.0  ;;  %3383 = vrcp.f32 %v2012_v63 }
 0x327   : > { %v3374_v20 = vpop.eup %3373  ;;  %v2299_v60 = vadd.f32 %v2298_v33, %v2297_v9  ;;  %v2208_v7 = vsel %vm1481_vm1, %v2131_v15, 0.0  ;;  %v1919_v10 = vpop.xlane.xlu1 %1918 }
 0x328   : > { %v2130_v8 = vmul.f32 %v3374_v20, %v4454_v48 }
 0x329   : > { %v1907_v41 = vpop.xlane.xlu0 %1906  ;;  %v4758_v61 = vadd.f32 %v2300_v34, %v2299_v60 }
 0x32a   : > { %v2207_v49 = vsel %vm1481_vm1, %v2130_v8, 0.0  ;;  %3385 = vrcp.f32 %v1907_v41 }
 0x32b   : > { %v2209_v24 = vadd.f32 %v2208_v7, %v2207_v49 }
 0x32d   : > { %v3376_v6 = vpop.eup %3375  ;;  %v2021_v50 = vpop.xlane.xlu0 %2020 }
 0x32e   : > { %v3378_v21 = vpop.eup %3377  ;;  %v2132_v62 = vmul.f32 %v3376_v6, %v4467_v26  ;;  %3387 = vrcp.f32 %v2021_v50 }
 0x32f   : > { %v3380_v52 = vpop.eup %3379  ;;  %v2171_v59 = vmul.f32 %v3378_v21, %v4461_v58 }
 0x330   : > { %v2210_v9 = vsel %vm1481_vm1, %v2132_v62, 0.0  ;;  %v2133_v40 = vmul.f32 %v3380_v52, %v4472_v55  ;;  %v2039_v55 = vpop.xlane.xlu1 %2038 }
 0x331   : > { %v3382_v48 = vpop.eup %3381  ;;  %v2211_v36 = vadd.f32 %v2210_v9, %v2209_v24  ;;  %v2018_v0 = vpop.xlane.xlu0 %2017  ;;  %v2313_v20 = vsel %vm1481_vm1, %v2171_v59, 0.0  ;;  %v2201_v59 = vrot.slane %v4752_v14, 4 }
 0x332   : > { %v2212_v54 = vsel %vm1481_vm1, %v2133_v40, 0.0  ;;  %v2134_v12 = vmul.f32 %v3382_v48, %v4477_v51  ;;  %3389 = vrcp.f32 %v2018_v0 }
 0x333   : > { %v3384_v28 = vpop.eup %3383  ;;  %v2213_v39 = vadd.f32 %v2212_v54, %v2211_v36 }
 0x334   : > { %v2214_v26 = vsel %vm1481_vm1, %v2134_v12, 0.0  ;;  %v2170_v63 = vmul.f32 %v3384_v28, %v4482_v43  ;;  %v2045_v49 = vpop.xlane.xlu1 %2044 }
 0x335   : > { %v2215_v33 = vadd.f32 %v2214_v26, %v2213_v39  ;;  %v1913_v15 = vpop.xlane.xlu0 %1912  ;;  %v2202_v26 = vadd.f32 %v2201_v59, %v4752_v14 }
 0x336   : > { %v2312_v60 = vsel %vm1481_vm1, %v2170_v63, 0.0  ;;  %3391 = vrcp.f32 %v1913_v15 }
 0x337   : > { %v3386_v34 = vpop.eup %3385  ;;  %v2314_v58 = vadd.f32 %v2313_v20, %v2312_v60 }
 0x338   : > { %v2135_v8 = vmul.f32 %v3386_v34, %v4492_v31  ;;  %v2042_v62 = vpop.xlane.xlu1 %2041 }
 0x339   : > { %v2027_v41 = vpop.xlane.xlu0 %2026 }
 0x33a   : > { %v2216_v51 = vsel %vm1481_vm1, %v2135_v8, 0.0 }
 0x33b   : > { %v2217_v7 = vadd.f32 %v2216_v51, %v2215_v33  ;;  %v3388_v24 = vpop.eup %3387 }
 0x33c   : > { %v2173_v50 = vmul.f32 %v3388_v24, %v4499_v32 }
 0x33d   : > { %v1910_v6 = vpop.xlane.xlu0 %1909 }
 0x33e   : > { %3393 = vrcp.f32 %v1910_v6  ;;  %v2317_v40 = vsel %vm1481_vm1, %v2173_v50, 0.0 }
 0x33f   : > { %v3390_v43 = vpop.eup %3389  ;;  %3395 = vrcp.f32 %v2027_v41  ;;  %v4778_v48 = vpop.xlane.xlu1 %2047 }
 0x340   : > { %v2172_v21 = vmul.f32 %v3390_v43, %v4509_v18 }
 0x341   : > { %v2024_v52 = vpop.xlane.xlu0 %2023 }
 0x342   : > { %v2315_v9 = vsel %vm1481_vm1, %v2172_v21, 0.0  ;;  %3397 = vrcp.f32 %v2024_v52 }
 0x343   : > { %v2316_v31 = vadd.f32 %v2315_v9, %v2314_v58  ;;  %v3392_v0 = vpop.eup %3391  ;;  %v4781_v32 = vpop.xlane.xlu1 %1942  ;;  %3399 = vrcp.f32 %v1919_v10 }
 0x344   : > { %v2137_v18 = vmul.f32 %v3392_v0, %v4520_v22  ;;  %v2203_v22 = vrot.slane %v2202_v26, 2  ;;  %3401 = vrcp.f32 %v2039_v55 }
 0x345   : > { %v2318_v36 = vadd.f32 %v2317_v40, %v2316_v31 }
 0x346   : > { %v2220_v34 = vsel %vm1481_vm1, %v2137_v18, 0.0  ;;  %v2204_v6 = vadd.f32 %v2203_v22, %v2202_v26 }
 0x348   : > { %v2205_v21 = vrot.slane %v2204_v6, 1 }
 0x349   : > { %v1916_v54 = vpop.xlane.xlu0 %1915 }
 0x34a   : > { %3403 = vrcp.f32 %v1916_v54 }
 0x34b   : > { %v3394_v12 = vpop.eup %3393  ;;  %3405 = vrcp.f32 %v2042_v62 }
 0x34c   : > { %v2136_v28 = vmul.f32 %v3394_v12, %v4538_v57  ;;  %v3396_v39 = vpop.eup %3395 }
 0x34d   : > { %v1925_v63 = vpop.xlane.xlu0 %1924  ;;  %v2175_v58 = vmul.f32 %v3396_v39, %v4531_v46 }
 0x34e   : > { %v2218_v33 = vsel %vm1481_vm1, %v2136_v28, 0.0 }
 0x34f   : > { %v3398_v15 = vpop.eup %3397  ;;  %v2219_v20 = vadd.f32 %v2218_v33, %v2217_v7  ;;  %v4787_v60 = vpop.xlane.xlu1 %1945  ;;  %v2321_v10 = vsel %vm1481_vm1, %v2175_v58, 0.0 }
 0x350   : > { %v2174_v8 = vmul.f32 %v3398_v15, %v4548_v44  ;;  %v3400_v40 = vpop.eup %3399 }
 0x351   : > { %v2221_v57 = vadd.f32 %v2220_v34, %v2219_v20  ;;  %v1922_v41 = vpop.xlane.xlu0 %1921  ;;  %v2139_v34 = vmul.f32 %v3400_v40, %v4487_v3 }
 0x352   : > { %v2319_v14 = vsel %vm1481_vm1, %v2174_v8, 0.0  ;;  %3407 = vrcp.f32 %v1922_v41 }
 0x353   : > { %v2222_v51 = vrot.slane %v2221_v57, 4  ;;  %v2320_v24 = vadd.f32 %v2319_v14, %v2318_v36  ;;  %v4793_v7 = vpop.xlane.xlu1 %1954  ;;  %3409 = vrcp.f32 %v2045_v49  ;;  %v2206_v36 = vadd.f32 %v2205_v21, %v2204_v6  ;;  %v3402_v49 = vpop.eup %3401  ;;  %v5097_v14 = vld [vmem:[#allocation31_spill] sm:$0xff] }
 0x354   : > { %v2179_v26 = vmul.f32 %v3402_v49, %v4504_v19 }
 0x355   : > { %v2223_v46 = vadd.f32 %v2222_v51, %v2221_v57  ;;  %v2036_v43 = vpop.xlane.xlu0 %2035  ;;  %v4796_v44 = vadd.f32 %v2321_v10, %v2320_v24 }
 0x356   : > { %3411 = vrcp.f32 %v2036_v43  ;;  %v2334_v41 = vsel %vm1481_vm1, %v2179_v26, 0.0 }
 0x357   : > { %v2224_v55 = vrot.slane %v2223_v46, 2  ;;  %v1952_v50 = vpop.xlane.xlu1 %1951  ;;  %3413 = vrcp.f32 %v1925_v63  ;;  %v3404_v54 = vpop.eup %3403 }
 0x358   : > { %v3406_v28 = vpop.eup %3405  ;;  %v2138_v15 = vmul.f32 %v3404_v54, %v4560_v37 }
 0x359   : > { %v2225_v52 = vadd.f32 %v2224_v55, %v2223_v46  ;;  %v1931_v9 = vpop.xlane.xlu0 %1930  ;;  %v2180_v8 = vmul.f32 %v3406_v28, %v4526_v42 }
 0x35a   : > { %v2228_v37 = vsel %vm1481_vm1, %v2138_v15, 0.0 }
 0x35b   : > { %v2226_v62 = vrot.slane %v2225_v52, 1  ;;  %v4798_v31 = vpop.xlane.xlu1 %1960 }
 0x35d   : > { %v2227_v0 = vadd.f32 %v2226_v62, %v2225_v52  ;;  %v1928_v59 = vpop.xlane.xlu0 %1927 }
 0x35e   : > { %3415 = vrcp.f32 %v1928_v59 }
 0x35f   : > { %v1958_v12 = vpop.xlane.xlu1 %1957  ;;  %v4800_v18 = vsel %vm2362_vm3, %v2227_v0, %v2206_v36  ;;  %3417 = vrcp.f32 %v1931_v9  ;;  %v3408_v39 = vpop.eup %3407 }
 0x360   : > { %v3410_v33 = vpop.eup %3409  ;;  %v2140_v22 = vmul.f32 %v3408_v39, %v4580_v5  ;;  %v2229_v5 = vsel %vm1481_vm1, %v2139_v34, 0.0 }
 0x361   : > { %v1937_v63 = vpop.xlane.xlu0 %1936  ;;  %v2181_v51 = vmul.f32 %v3410_v33, %v5097_v14 }
 0x362   : > { %3419 = vrcp.f32 %v1937_v63  ;;  %v2231_v6 = vsel %vm1481_vm1, %v2140_v22, 0.0 }
 0x363   : > { %v3412_v20 = vpop.eup %3411  ;;  %v2051_v58 = vpop.xlane.xlu1 %2050  ;;  %3421 = vrcp.f32 %v4781_v32  ;;  %v2230_v32 = vadd.f32 %v2229_v5, %v2228_v37  ;;  %v2338_v55 = vsel %vm1481_vm1, %v2181_v51, 0.0 }
 0x364   : > { %v2178_v57 = vmul.f32 %v3412_v20, %v4591_v17  ;;  %v3414_v3 = vpop.eup %3413  ;;  %v2336_v17 = vsel %vm1481_vm1, %v2180_v8, 0.0 }
 0x365   : > { %v1934_v19 = vpop.xlane.xlu0 %1933  ;;  %v2141_v21 = vmul.f32 %v3414_v3, %v4568_v16  ;;  %v2232_v9 = vadd.f32 %v2231_v6, %v2230_v32 }
 0x366   : > { %v2333_v24 = vsel %vm1481_vm1, %v2178_v57, 0.0  ;;  %3423 = vrcp.f32 %v1934_v19 }
 0x367   : > { %v2335_v10 = vadd.f32 %v2334_v41, %v2333_v24  ;;  %v2030_v42 = vpop.xlane.xlu1 %2029  ;;  %3425 = vrcp.f32 %v4787_v60  ;;  %v2233_v59 = vsel %vm1481_vm1, %v2141_v21, 0.0 }
 0x368   : > { %v2234_v54 = vadd.f32 %v2233_v59, %v2232_v9 }
 0x369   : > { %v2337_v46 = vadd.f32 %v2336_v17, %v2335_v10  ;;  %v1940_v43 = vpop.xlane.xlu0 %1939 }
 0x36a   : > { %3427 = vrcp.f32 %v1940_v43 }
 0x36b   : > { %v3416_v52 = vpop.eup %3415  ;;  %v4819_v62 = vadd.f32 %v2338_v55, %v2337_v46  ;;  %v2054_v40 = vpop.xlane.xlu1 %2053  ;;  %3429 = vrcp.f32 %v1952_v50 }
 0x36c   : > { %v2142_v36 = vmul.f32 %v3416_v52, %v4612_v13  ;;  %v3418_v0 = vpop.eup %3417 }
 0x36d   : > { %v1949_v60 = vpop.xlane.xlu0 %1948  ;;  %v2143_v28 = vmul.f32 %v3418_v0, %v4602_v1 }
 0x36e   : > { %v2235_v49 = vsel %vm1481_vm1, %v2142_v36, 0.0  ;;  %3431 = vrcp.f32 %v1949_v60 }
 0x36f   : > { %3433 = vrcp.f32 %v4793_v7  ;;  %v2057_v16 = vpop.xlane.xlu1 %2056  ;;  %v3420_v39 = vpop.eup %3419  ;;  %v2236_v26 = vadd.f32 %v2235_v49, %v2234_v54  ;;  %v2237_v15 = vsel %vm1481_vm1, %v2143_v28, 0.0 }
 0x370   : > { %3435 = vrcp.f32 %v4778_v48  ;;  %v3422_v63 = vpop.eup %3421  ;;  %v2145_v20 = vmul.f32 %v3420_v39, %v4626_v4 }
 0x371   : > { %v1967_v50 = vpop.xlane.xlu0 %1966  ;;  %3437 = vrcp.f32 %v4798_v31  ;;  %v2238_v1 = vadd.f32 %v2237_v15, %v2236_v26  ;;  %v2147_v48 = vmul.f32 %v3422_v63, %v4553_v53 }
 0x372   : > { %3439 = vrcp.f32 %v1958_v12  ;;  %v2241_v4 = vsel %vm1481_vm1, %v2145_v20, 0.0 }
 0x373   : > { %v3424_v13 = vpop.eup %3423  ;;  %v1964_v33 = vpop.xlane.xlu1 %1963  ;;  %3441 = vrcp.f32 %v2051_v58  ;;  %v2250_v53 = vsel %vm1481_vm1, %v2147_v48, 0.0 }
 0x374   : > { %v2144_v7 = vmul.f32 %v3424_v13, %v4637_v2  ;;  %v3426_v34 = vpop.eup %3425  ;;  %3443 = vrcp.f32 %v2054_v40  ;;  %v5098_v13 = vld [vmem:[#allocation32_spill] sm:$0xff] }
 0x375   : > { %v2006_v8 = vpop.xlane.xlu0 %2005  ;;  %3445 = vrcp.f32 %v1964_v33  ;;  %v2148_v41 = vmul.f32 %v3426_v34, %v4573_v47  ;;  %v5099_v34 = vld [vmem:[#allocation20_spill] sm:$0xff] }
 0x376   : > { %v2239_v22 = vsel %vm1481_vm1, %v2144_v7, 0.0  ;;  %3447 = vrcp.f32 %v2006_v8 }
 0x377   : > { %v3428_v31 = vpop.eup %3427  ;;  %v2240_v57 = vadd.f32 %v2239_v22, %v2238_v1  ;;  %v1973_v12 = vpop.xlane.xlu1 %1972  ;;  %3449 = vrcp.f32 %v1967_v50  ;;  %v2252_v47 = vsel %vm1481_vm1, %v2148_v41, 0.0 }
 0x378   : > { %v2146_v58 = vmul.f32 %v3428_v31, %v4648_v30  ;;  %v3430_v2 = vpop.eup %3429  ;;  %3451 = vrcp.f32 %v2030_v42  ;;  %v5100_v31 = vld [vmem:[#allocation23_spill] sm:$0xff] }
 0x379   : > { %v2242_v19 = vadd.f32 %v2241_v4, %v2240_v57  ;;  %v1985_v14 = vpop.xlane.xlu0 %1984  ;;  %3453 = vrcp.f32 %v2057_v16  ;;  %v2150_v17 = vmul.f32 %v3430_v2, %v4595_v29 }
 0x37a   : > { %v2249_v51 = vsel %vm1481_vm1, %v2146_v58, 0.0 }
 0x37b   : > { %v3432_v37 = vpop.eup %3431  ;;  %v2243_v24 = vrot.slane %v2242_v19, 4  ;;  %v2251_v3 = vadd.f32 %v2250_v53, %v2249_v51  ;;  %v1970_v10 = vpop.xlane.xlu1 %1969  ;;  %v2256_v29 = vsel %vm1481_vm1, %v2150_v17, 0.0  ;;  %v5103_v51 = vld [vmem:[#allocation21_spill] sm:$0xff] }
 0x37c   : > { %v3434_v5 = vpop.eup %3433  ;;  %v2149_v30 = vmul.f32 %v3432_v37, %v4659_v35  ;;  %3455 = vrcp.f32 %v1970_v10 }
 0x37d   : > { %v2244_v6 = vadd.f32 %v2243_v24, %v2242_v19  ;;  %v2253_v42 = vadd.f32 %v2252_v47, %v2251_v3  ;;  %3457 = vrcp.f32 %v1973_v12  ;;  %v2009_v32 = vpop.xlane.xlu0 %2008  ;;  %v3436_v46 = vpop.eup %3435  ;;  %v2151_v21 = vmul.f32 %v3434_v5, %v4584_v27  ;;  %v5102_v19 = vld [vmem:[#allocation22_spill] sm:$0xff] }
 0x37e   : > { %v2254_v43 = vsel %vm1481_vm1, %v2149_v30, 0.0  ;;  %3459 = vrcp.f32 %v2009_v32  ;;  %v3438_v55 = vpop.eup %3437  ;;  %v2182_v33 = vmul.f32 %v3436_v46, %v5098_v13 }
 0x37f   : > { %v2245_v52 = vrot.slane %v2244_v6, 2  ;;  %v2255_v9 = vadd.f32 %v2254_v43, %v2253_v42  ;;  %v1979_v40 = vpop.xlane.xlu1 %1978  ;;  %v3440_v36 = vpop.eup %3439  ;;  %v2258_v16 = vsel %vm1481_vm1, %v2151_v21, 0.0  ;;  %v2153_v1 = vmul.f32 %v3438_v55, %v5099_v34  ;;  %v5105_v43 = vld [vmem:[#allocation16_spill] sm:$0xff] }
 0x380   : > { %v3442_v0 = vpop.eup %3441  ;;  %3461 = vrcp.f32 %v1979_v40  ;;  %v2152_v27 = vmul.f32 %v3440_v36, %v4618_v38  ;;  %v2340_v2 = vsel %vm1481_vm1, %v2182_v33, 0.0  ;;  %v5109_v34 = vld [vmem:[#allocation28_spill] sm:$0xff] }
 0x381   : > { %v2246_v35 = vadd.f32 %v2245_v52, %v2244_v6  ;;  %v2257_v60 = vadd.f32 %v2256_v29, %v2255_v9  ;;  %v2033_v59 = vpop.xlane.xlu0 %2032  ;;  %v3444_v49 = vpop.eup %3443  ;;  %v2262_v5 = vsel %vm1481_vm1, %v2153_v1, 0.0  ;;  %v2341_v47 = vadd.f32 %v2340_v2, %v4819_v62  ;;  %v5106_v29 = vld [vmem:[#allocation18_spill] sm:$0xff] }
 0x382   : > { %3463 = vrcp.f32 %v2033_v59  ;;  %v3446_v54 = vpop.eup %3445  ;;  %v2260_v48 = vsel %vm1481_vm1, %v2152_v27, 0.0  ;;  %v2184_v22 = vmul.f32 %v3444_v49, %v4643_v45 }
 0x383   : > { %3465 = vrcp.f32 %v4703_v11  ;;  %v2247_v28 = vrot.slane %v2246_v35, 1  ;;  %v1976_v39 = vpop.xlane.xlu1 %1975  ;;  %v3448_v26 = vpop.eup %3447  ;;  %v2259_v50 = vadd.f32 %v2258_v16, %v2257_v60  ;;  %v2183_v11 = vmul.f32 %v3442_v0, %v4620_v23  ;;  %v5101_v23 = vld [vmem:[#allocation25_spill] sm:$0xff] }
 0x384   : > { %3467 = vrcp.f32 %v1976_v39  ;;  %v3450_v63 = vpop.eup %3449  ;;  %v2154_v8 = vmul.f32 %v3446_v54, %v4663_v25  ;;  %v2168_v57 = vmul.f32 %v3448_v26, %v5100_v31  ;;  %v2344_v17 = vsel %vm1481_vm1, %v2184_v22, 0.0  ;;  %v5107_v26 = vld [vmem:[#allocation17_spill] sm:$0xff]  ;;  %v5110_v22 = vld [vmem:[#allocation30_spill] sm:$0xff] }
 0x385   : > { %v2391_v15 = vpop.permute.xlu0 %2390  ;;  %v2248_v20 = vadd.f32 %v2247_v28, %v2246_v35  ;;  %v3452_v7 = vpop.eup %3451  ;;  %3469 = vrcp.f32 %v1985_v14  ;;  %v2261_v4 = vadd.f32 %v2260_v48, %v2259_v50  ;;  %v2155_v58 = vmul.f32 %v3450_v63, %v5101_v23 }
 0x386   : > { %3115 = vmatpush3.msra.mxu1 %v2391_v15  ;;  %v3454_v38 = vpop.eup %3453  ;;  %v2176_v14 = vmul.f32 %v3452_v7, %v5102_v19  ;;  %v2342_v53 = vsel %vm1481_vm1, %v2183_v11, 0.0  ;;  %v2270_v24 = vsel %vm1481_vm1, %v2154_v8, 0.0  ;;  %v2302_v30 = vsel %vm1481_vm1, %v2168_v57, 0.0  ;;  %v5108_v15 = vld [vmem:[#allocation27_spill] sm:$0xff] }
 0x387   : > { %3116 = vmatprep.subr.mxu1 %v5096_v56  ;;  %v2389_v12 = vpop.permute.xlu1 %2388  ;;  %v4857_v41 = vsel %vm2364_vm4, %v2248_v20, %v4800_v18  ;;  %v2185_v37 = vmul.f32 %v3454_v38, %v5103_v51  ;;  %v5104_v18 = vld [vmem:[#allocation24_spill] sm:$0xff]  ;;  %v2263_v42 = vadd.f32 %v2262_v5, %v2261_v4  ;;  %v2271_v32 = vsel %vm1481_vm1, %v2155_v58, 0.0 }
 0x388   : > { %3117 = vmatpush3.msra.mxu1 %v2389_v12  ;;  %v2343_v21 = vadd.f32 %v2342_v53, %v2341_v47  ;;  %v2323_v52 = vsel %vm1481_vm1, %v2176_v14, 0.0  ;;  %v2272_v9 = vadd.f32 %v2271_v32, %v2270_v24  ;;  %v2303_v36 = vadd.f32 %v2302_v30, %v4758_v61 }
 0x389   : > { %v3456_v25 = vpop.eup %3455  ;;  %3118 = vmatprep.subr.mxu1 %v5096_v56  ;;  %v2346_v40 = vsel %vm1481_vm1, %v2185_v37, 0.0  ;;  %v2383_v54 = vpop.permute.xlu0 %2382  ;;  %v2264_v28 = vrot.slane %v2263_v42, 4  ;;  %v2324_v13 = vadd.f32 %v2323_v52, %v4796_v44 }
 0x38a   : > { %v3458_v45 = vpop.eup %3457  ;;  %v2156_v3 = vmul.f32 %v3456_v25, %v5104_v18  ;;  %v2345_v59 = vadd.f32 %v2344_v17, %v2343_v21  ;;  %v5111_v25 = vld [vmem:[#allocation26_spill] sm:$0xff] }
 0x38b   : > { %v3460_v10 = vpop.eup %3459  ;;  %v2387_v6 = vpop.permute.xlu1 %2386  ;;  %v2157_v0 = vmul.f32 %v3458_v45, %v5106_v29  ;;  %v2265_v12 = vadd.f32 %v2264_v28, %v2263_v42 }
 0x38c   : > { %v2273_v46 = vsel %vm1481_vm1, %v2156_v3, 0.0  ;;  %v2169_v55 = vmul.f32 %v3460_v10, %v5105_v43  ;;  %3119 = vmatpush3.msra.mxu1 %v2387_v6  ;;  %v2347_v33 = vadd.f32 %v2346_v40, %v2345_v59 }
 0x38d   : > { %3120 = vmatprep.subr.mxu1 %v5096_v56  ;;  %v3462_v62 = vpop.eup %3461  ;;  %v2274_v49 = vadd.f32 %v2273_v46, %v2272_v9  ;;  %v2275_v61 = vsel %vm1481_vm1, %v2157_v0, 0.0  ;;  %v2379_v58 = vpop.permute.xlu0 %2378  ;;  %v2266_v24 = vrot.slane %v2265_v12, 2 }
 0x38e   : > { %v2304_v35 = vsel %vm1481_vm1, %v2169_v55, 0.0  ;;  %v2159_v20 = vmul.f32 %v3462_v62, %v5108_v15  ;;  %v2348_v14 = vrot.slane %v2347_v33, 4  ;;  %v2509_v15 = vld [vmem:[%s4988_s9 + $0x10] sm:$0xff] }
 0x38f   : > { %v3464_v60 = vpop.eup %3463  ;;  %v2385_v16 = vpop.permute.xlu1 %2384  ;;  %v2305_v39 = vadd.f32 %v2304_v35, %v2303_v36  ;;  %v2276_v38 = vadd.f32 %v2275_v61, %v2274_v49  ;;  %v2267_v17 = vadd.f32 %v2266_v24, %v2265_v12 }
 0x390   : > { %v3466_v27 = vpop.eup %3465  ;;  %v2177_v50 = vmul.f32 %v3464_v60, %v5107_v26  ;;  %3121 = vmatpush3.msra.mxu1 %v2385_v16  ;;  %v2279_v19 = vsel %vm1481_vm1, %v2159_v20, 0.0  ;;  %v2349_v5 = vadd.f32 %v2348_v14, %v2347_v33 }
 0x391   : > { %v3468_v63 = vpop.eup %3467  ;;  %3122 = vmatprep.subr.mxu1 %v5096_v56  ;;  %v2160_v44 = vmul.f32 %v3466_v27, %v5110_v22  ;;  %v2306_v31 = vrot.slane %v2305_v39, 4  ;;  %v2268_v43 = vrot.slane %v2267_v17, 1  ;;  %v2503_v22 = vld [vmem:[%s4987_s8] sm:$0xff] }
 0x392   : > { %v2325_v7 = vsel %vm1481_vm1, %v2177_v50, 0.0  ;;  %v2158_v1 = vmul.f32 %v3468_v63, %v5109_v34  ;;  %3123 = vmatpush3.msra.mxu1 %v2383_v54  ;;  %v3470_v11 = vpop.eup %3469  ;;  %v2350_v32 = vrot.slane %v2349_v5, 2  ;;  %v5112_v50 = vld [vmem:[#allocation7_spill] sm:$0xff] }
 0x393   : > { %v2326_v8 = vadd.f32 %v2325_v7, %v2324_v13  ;;  %3124 = vmatprep.subr.mxu1 %v5096_v56  ;;  %v2381_v48 = vpop.permute.xlu1 %2380  ;;  %v2161_v2 = vmul.f32 %v3470_v11, %v5111_v25  ;;  %v2281_v51 = vsel %vm1481_vm1, %v2160_v44, 0.0  ;;  %v2307_v37 = vadd.f32 %v2306_v31, %v2305_v39  ;;  %v2508_v7 = vld [vmem:[%s4988_s9 + $0x8] sm:$0xff]  ;;  %v3471_v31 = vld [vmem:[%s4982_s3] sm:$0xff] }
 0x394   : > { %v2277_v57 = vsel %vm1481_vm1, %v2158_v1, 0.0  ;;  %3125 = vmatpush3.msra.mxu1 %v2381_v48  ;;  %v2351_v9 = vadd.f32 %v2350_v32, %v2349_v5  ;;  %v2269_v40 = vadd.f32 %v2268_v43, %v2267_v17  ;;  %v2496_v63 = vrot.slane %v5112_v50, 4  ;;  %v2507_v1 = vld [vmem:[%s4988_s9] sm:$0xff]  ;;  %v2504_v48 = vld [vmem:[%s4987_s8 + $0x8] sm:$0xff] }
 0x395   : > { %v2327_v4 = vrot.slane %v2326_v8, 4  ;;  %v2278_v23 = vadd.f32 %v2277_v57, %v2276_v38  ;;  %3126 = vmatprep.subr.mxu1 %v5096_v56  ;;  %v2283_v10 = vsel %vm1481_vm1, %v2161_v2, 0.0  ;;  %v2308_v30 = vrot.slane %v2307_v37, 2  ;;  %v2505_v38 = vld [vmem:[%s4987_s8 + $0x10] sm:$0xff] }
 0x396   : > { %3127 = vmatpush3.msra.mxu1 %v2379_v58  ;;  %v2352_v35 = vrot.slane %v2351_v9, 1  ;;  %v2367_v49 = vsel %vm2366_vm5, %v2269_v40, %v4857_v41  ;;  %v2497_v13 = vadd.f32 %v2496_v63, %v5112_v50  ;;  %v2510_v41 = vld [vmem:[%s4988_s9 + $0x18] sm:$0xff] }
 0x397   : > { %v2280_v45 = vadd.f32 %v2279_v19, %v2278_v23  ;;  %3128 = vmatprep.subr.mxu1 %v5096_v56  ;;  %v2377_v53 = vpop.permute.xlu1 %2376  ;;  %v2328_v3 = vadd.f32 %v2327_v4, %v2326_v8  ;;  %v2309_v55 = vadd.f32 %v2308_v30, %v2307_v37  ;;  %v2506_v8 = vld [vmem:[%s4987_s8 + $0x18] sm:$0xff]  ;;  %v2657_v37 = vld [vmem:[%s4989_s10] sm:$0x1] }
 0x398   : > { %3129 = vmatpush3.msra.mxu1 %v2377_v53  ;;  %v2353_v27 = vadd.f32 %v2352_v35, %v2351_v9  ;;  %v2498_v33 = vrot.slane %v2497_v13, 2 }
 0x399   : > { %v2282_v18 = vadd.f32 %v2281_v51, %v2280_v45  ;;  %3133 = vmatprep.subr.mxu1 %v5096_v56  ;;  %v2329_v42 = vrot.slane %v2328_v3, 2  ;;  %v2310_v36 = vrot.slane %v2309_v55, 1 }
 0x39a   : > { %v2499_v61 = vadd.f32 %v2498_v33, %v2497_v13 }
 0x39b   : > { %v2284_v47 = vadd.f32 %v2283_v10, %v2282_v18  ;;  %v2330_v52 = vadd.f32 %v2329_v42, %v2328_v3  ;;  %v2311_v59 = vadd.f32 %v2310_v36, %v2309_v55 }
 0x39c   : > { %v2500_v20 = vrot.slane %v2499_v61, 1 }
 0x39d   : > { %v2285_v6 = vrot.slane %v2284_v47, 4  ;;  %v2331_v0 = vrot.slane %v2330_v52, 1 }
 0x39e   : > { %v2501_v34 = vadd.f32 %v2500_v20, %v2499_v61 }
 0x39f   : > { %v2286_v46 = vadd.f32 %v2285_v6, %v2284_v47  ;;  %v2332_v54 = vadd.f32 %v2331_v0, %v2330_v52 }
 0x3a0   : > { %v2502_v11 = vmul.f32 0.015625, %v2501_v34 }
 0x3a1   : > { %v2287_v21 = vrot.slane %v2286_v46, 2 }
 0x3a3   : > { %v2288_v62 = vadd.f32 %v2287_v21, %v2286_v46 }
 0x3a5   : > { %v2289_v29 = vrot.slane %v2288_v62, 1 }
 0x3a7   : > { %v2290_v60 = vadd.f32 %v2289_v29, %v2288_v62 }
 0x3a9   : > { %v2369_v16 = vsel %vm2368_vm6, %v2290_v60, %v2367_v49 }
 0x3aa   : > { %v2371_v28 = vsel %vm2370_vm7, %v2311_v59, %v2369_v16 }
 0x3ab   : > { %v2373_v39 = vsel %vm2372_vm8, %v2332_v54, %v2371_v28 }
 0x3ac   : > { %v2375_v26 = vsel %vm2374_vm9, %v2353_v27, %v2373_v39 }
 0x3ad   : > { %3131 = vmatmul.mubr.msk.f32.vlgmr.msra.gmra.mxu1 %vm1481_vm1, %v2375_v26 }
 0x3ae   : > { %3141 = vmatprep.mubr.msk.f32.mxu1 %vm3537_vm2, %v5096_v56  ;;  %3134 = vmatpush3.msra.mxu1 %v2510_v41 }
 0x3af   : > { %3135 = vmatprep.subr.mxu1 %v5096_v56 }
 0x3b0   : > { %3136 = vmatpush3.msra.mxu1 %v2509_v15 }
 0x3b1   : > { %3137 = vmatprep.subr.mxu1 %v5096_v56 }
 0x3b2   : > { %3138 = vmatpush3.msra.mxu1 %v2508_v7 }
 0x3b3   : > { %3139 = vmatprep.subr.mxu1 %v5096_v56 }
 0x3b4   : > { %3140 = vmatpush3.msra.mxu1 %v2507_v1 }
 0x3b5   : > { %3144 = vmatprep.subr.mxu1 %v5096_v56  ;;  %3142 = vmatmul.mubr.msk.f32.vlgmr.msra.gmra.mxu1 %vm455_vm0, %v2502_v11 }
 0x3b6   : > { %3152 = vmatprep.mubr.msk.f32.mxu1 %vm3537_vm2, %v5096_v56  ;;  %3145 = vmatpush3.msra.mxu1 %v2506_v8 }
 0x3b7   : > { %3146 = vmatprep.subr.mxu1 %v5096_v56 }
 0x3b8   : > { %3147 = vmatpush3.msra.mxu1 %v2505_v38 }
 0x3b9   : > { %3148 = vmatprep.subr.mxu1 %v5096_v56 }
 0x3ba   : > { %3149 = vmatpush3.msra.mxu1 %v2504_v48 }
 0x3bb   : > { %3150 = vmatprep.subr.mxu1 %v5096_v56 }
 0x3bc   : > { %3151 = vmatpush3.msra.mxu1 %v2503_v22 }
 0x46d   : > { %v2468_v44 = vpop.f32.mrf.mxu1 }
 0x46e   : > { %v2472_v57 = vmul.f32 %v3471_v31, %v2468_v44 }
 0x46f   : > { %v3132_v12 = vpop.f32.mrf.mxu1 }
 0x470   : > { %v2473_v4 = vsel %vm455_vm0, %v2472_v57, 0.0 }
 0x471   : > { %v2474_v23 = vrot.slane %v2473_v4, 4 }
 0x473   : > { %v2475_v58 = vadd.f32 %v2474_v23, %v2473_v4 }
 0x475   : > { %v2476_v25 = vrot.slane %v2475_v58, 2  ;;  %v2580_v56 = vpop.f32.mrf.mxu1 }
 0x477   : > { %v2477_v2 = vadd.f32 %v2476_v25, %v2475_v58  ;;  %v3143_v53 = vpop.f32.mrf.mxu1 }
 0x479   : > { %v2478_v19 = vrot.slane %v2477_v2, 1 }
 0x47b   : > { %v2479_v14 = vadd.f32 %v2478_v19, %v2477_v2 }
 0x47d   : > { %v2480_v45 = vmul.f32 0.015625, %v2479_v14 }
 0x47f   : > { %3153 = vmatmul.mubr.msk.f32.vlgmr.msra.gmra.mxu1 %vm455_vm0, %v2480_v45 }
 0x53f   : > { %v2653_v51 = vpop.f32.mrf.mxu1 }
 0x540   : > { %v2654_v24 = vadd.f32 %v2653_v51, %v2580_v56 }
 0x541   : > { %v3154_v18 = vpop.f32.mrf.mxu1 }
 0x542   : > { %v2658_v3 = vadd.f32 %v2657_v37, %v2654_v24 }
 0x544   : > { %2660 = vst.msk [vmem:[%s393_s29] sm:$0x1] %vm2659_vm10, %v2658_v3 }
 0x545   : > { %3485 = shalt.err (!%p3482_p3)
}
 0x546   : > { %s3486_s24 = scalar_lea.hbm %s2672_s12, 16  ;;  %s3490_s29 = scalar_lea.hbm %s4990_s11, 32 }
 0x547   : > { %p3487_p4 = scmp.ne.s32.totalorder %s2672_s12, %s3486_s24  ;;  %p3491_p9 = scmp.lt.s32.totalorder %s2672_s12, %s4990_s11 }
 0x548   : > { %p3492_p10 = scmp.lt.s32.totalorder %s3490_s29, %s3486_s24 }
 0x549   : > { %p3488_p7 = pnand %p3487_p4, %p3637_p5 }
 0x54a   : > { %p3493_p11 = por %p3492_p10, %p3491_p9 }
 0x54b   : > { %p3489_p8 = pneg %p3488_p7 }
 0x54d   : > { %p3494_p12 = pnand %p3493_p11, %p3489_p8 }
 0x54f   : > { %3497 = shalt.err (!%p3494_p12)
}
 0x550   : > { %3171 = dma.vmem_to_hbm [thread:$0]  (%p3637_p5), %s2675_s19, 16, %s2672_s12, %s2662_s15  }
 0x551 PF: > { %p3177_p13 = scmp.ge.s32.totalorder %s3532_s20, 2  ;;  %s2686_s22 = sand.u32 1, %s3520_s17  }
 0x552   : > { %s2687_s30 = scalar_lea.sflag [#allocation3], %s2686_s22 }
 0x553   : > { %p3174_p0 = pnand %p3177_p13, %p3641_p6 }
 0x555   : > { %p3175_p1 = pneg %p3174_p0 }
 0x557   : > { %3515 = dma.done.wait (%p3175_p1), %s2687_s30, 16  }
 0x558   : > { %3517 = vsyncadd (%p3175_p1), %s2687_s30, 4294967280  ;;  %s5113_s21 = sld [smem:[#allocation5_spill]]  ;;  %p21_p2 = scmp.ge.s32.totalorder %s3624_s23, 4  }
 0x559   : > { %s5114_s19 = sld [smem:[#allocation6_spill]]  ;;  %s5115_s17 = smov %s3524_s18 }
 0x55a   : > { %s5117_s20 = smov %s3624_s23  ;;  %23 = sbr.rel (!%p21_p2) target bundleno = 3 (0x3), region = 102 }
 0x55e   : > { %s5116_s18 = smov %s5113_s21 }
 0x55f   :  { %2691 = vsyncpa [#allocation3], 1 }
 0x560   :  { %2693 = vsyncpa [#allocation3 + $0x1], 1 }

</bundles_post_ra>
